<compile_context>
chip_gen: v7x
topology: tpu7x:2x2x1
jax: 0.10.0
libtpu: 0.0.40
codegen_flags: <defaults>
</compile_context>

<pallas_src>
import functools
import math

import jax
import jax.numpy as jnp
from jax.experimental import pallas as pl
from jax.experimental.pallas import tpu as pltpu

EPS = 1e-6


def _device_kind():
    try:
        return jax.devices()[0].device_kind.lower()
    except Exception:
        return ""


_KIND = _device_kind()
# 128-MiB-VMEM generations get bigger tiles / higher vmem limit; v7x (64 MiB)
# and anything unrecognised stay conservative.
if any(t in _KIND for t in ("v4", "v5", "v6")):
    VMEM_LIMIT = 100 * 1024 * 1024
    TM_TARGET, TN_TARGET, TK_TARGET, TH_TARGET, TQ_TARGET = 1024, 512, 1024, 1024, 256
else:
    VMEM_LIMIT = 48 * 1024 * 1024
    TM_TARGET, TN_TARGET, TK_TARGET, TH_TARGET, TQ_TARGET = 512, 256, 512, 512, 256


def _pick_tile(dim, target, align):
    """Largest tile <= target that is a multiple of `align` and divides `dim`.
    Falls back to the full dim (always legal for a BlockSpec)."""
    if dim <= target:
        return dim
    t = (target // align) * align
    while t >= align:
        if dim % t == 0:
            return t
        t -= align
    # TODO(synk): ragged (non-divisible) dims fall back to full-dim blocks;
    # a masked pl.cdiv grid would be needed to tile them without padding risk.
    return dim


# ---------------------------------------------------------------------------
# Kernel 1: fused RMSNorm + matmul (+ bias) (+ residual).
# Grid (M-tiles, N-tiles); K whole (RMSNorm needs the full row). The
# normalized row-slab is computed once per M tile (j == 0) into a bf16 VMEM
# scratch and reused across all N tiles.
# ---------------------------------------------------------------------------
def _norm_matmul_kernel(*refs, has_bias, has_res):
    x_ref, nw_ref, w_ref = refs[:3]
    idx = 3
    b_ref = refs[idx] if has_bias else None
    idx += int(has_bias)
    res_ref = refs[idx] if has_res else None
    idx += int(has_res)
    o_ref = refs[idx]
    xn_ref = refs[idx + 1]

    j = pl.program_id(1)

    @pl.when(j == 0)
    def _():
        x = x_ref[...].astype(jnp.float32)
        ms = jnp.mean(x * x, axis=-1, keepdims=True)
        xn = x * jax.lax.rsqrt(ms + EPS) * nw_ref[...].astype(jnp.float32)
        xn_ref[...] = xn.astype(xn_ref.dtype)

    acc = jnp.dot(xn_ref[...], w_ref[...], preferred_element_type=jnp.float32)
    if has_bias:
        acc = acc + b_ref[...].astype(jnp.float32)
    if has_res:
        acc = acc + res_ref[...].astype(jnp.float32)
    o_ref[...] = acc.astype(o_ref.dtype)


def fused_norm_matmul(x, norm_w, w, b=None, res=None, out_dtype=None):
    if out_dtype is None:
        out_dtype = x.dtype
    m, k = x.shape
    n = w.shape[1]
    tm = _pick_tile(m, TM_TARGET, 8)
    tn = _pick_tile(n, TN_TARGET, 128)
    grid = (m // tm, n // tn)

    in_specs = [
        pl.BlockSpec((tm, k), lambda i, j: (i, 0)),   # x row-slab (resident over j)
        pl.BlockSpec((1, k), lambda i, j: (0, 0)),    # norm weight
        pl.BlockSpec((k, tn), lambda i, j: (0, j)),   # weight column tile (bf16)
    ]
    args = [x, norm_w, w]
    if b is not None:
        in_specs.append(pl.BlockSpec((1, tn), lambda i, j: (0, j)))
        args.append(b)
    if res is not None:
        in_specs.append(pl.BlockSpec((tm, tn), lambda i, j: (i, j)))
        args.append(res)

    kern = functools.partial(_norm_matmul_kernel,
                             has_bias=b is not None, has_res=res is not None)
    return pl.pallas_call(
        kern,
        grid=grid,
        in_specs=in_specs,
        out_specs=pl.BlockSpec((tm, tn), lambda i, j: (i, j)),
        out_shape=jax.ShapeDtypeStruct((m, n), out_dtype),
        scratch_shapes=[pltpu.VMEM((tm, k), w.dtype)],   # cached normalized slab
        compiler_params=pltpu.CompilerParams(
            dimension_semantics=("parallel", "arbitrary"),
            vmem_limit_bytes=VMEM_LIMIT),
    )(*args)


# ---------------------------------------------------------------------------
# Kernel 2: tiled matmul (+ bias) (+ residual); M/N/K grid, f32 VMEM
# accumulator, bf16 MXU operands.
# ---------------------------------------------------------------------------
def _matmul_bias_res_kernel(*refs, has_bias, has_res):
    x_ref, w_ref = refs[:2]
    idx = 2
    b_ref = refs[idx] if has_bias else None
    idx += int(has_bias)
    res_ref = refs[idx] if has_res else None
    idx += int(has_res)
    o_ref, acc_ref = refs[idx], refs[idx + 1]

    kk = pl.program_id(2)

    @pl.when(kk == 0)
    def _():
        acc_ref[...] = jnp.zeros_like(acc_ref)

    acc_ref[...] += jnp.dot(x_ref[...].astype(w_ref.dtype), w_ref[...],
                            preferred_element_type=jnp.float32)

    @pl.when(kk == pl.num_programs(2) - 1)
    def _():
        acc = acc_ref[...]
        if has_bias:
            acc = acc + b_ref[...].astype(jnp.float32)
        if has_res:
            acc = acc + res_ref[...].astype(jnp.float32)
        o_ref[...] = acc.astype(o_ref.dtype)


def matmul_bias_res(x, w, b=None, res=None, out_dtype=None):
    if out_dtype is None:
        out_dtype = x.dtype
    m, k = x.shape
    n = w.shape[1]
    tm = _pick_tile(m, TM_TARGET, 8)
    tn = _pick_tile(n, TN_TARGET, 128)
    tk = _pick_tile(k, TK_TARGET, 128)
    grid = (m // tm, n // tn, k // tk)

    in_specs = [
        pl.BlockSpec((tm, tk), lambda i, j, kk: (i, kk)),
        pl.BlockSpec((tk, tn), lambda i, j, kk: (kk, j)),
    ]
    args = [x, w]
    if b is not None:
        in_specs.append(pl.BlockSpec((1, tn), lambda i, j, kk: (0, j)))
        args.append(b)
    if res is not None:
        in_specs.append(pl.BlockSpec((tm, tn), lambda i, j, kk: (i, j)))
        args.append(res)

    kern = functools.partial(_matmul_bias_res_kernel,
                             has_bias=b is not None, has_res=res is not None)
    return pl.pallas_call(
        kern,
        grid=grid,
        in_specs=in_specs,
        out_specs=pl.BlockSpec((tm, tn), lambda i, j, kk: (i, j)),
        out_shape=jax.ShapeDtypeStruct((m, n), out_dtype),
        scratch_shapes=[pltpu.VMEM((tm, tn), jnp.float32)],
        compiler_params=pltpu.CompilerParams(
            dimension_semantics=("parallel", "parallel", "arbitrary"),
            vmem_limit_bytes=VMEM_LIMIT),
    )(*args)


# ---------------------------------------------------------------------------
# Kernel 3: fused RMSNorm + Linear + SiLU + Linear + residual (MLP branch).
# Grid (M-tiles, hidden-tiles); normalized slab cached (bf16) at j == 0,
# accumulator seeded with residual + b2; each hidden tile contributes
# SiLU(xn@w1_j + b1_j) @ w2_j.
# ---------------------------------------------------------------------------
def _norm_mlp_kernel(x_ref, nw_ref, w1_ref, b1_ref, w2_ref, b2_ref,
                     o_ref, acc_ref, xn_ref):
    j = pl.program_id(1)

    @pl.when(j == 0)
    def _():
        x = x_ref[...].astype(jnp.float32)
        acc_ref[...] = x + b2_ref[...].astype(jnp.float32)   # residual + b2, once
        ms = jnp.mean(x * x, axis=-1, keepdims=True)
        xn = x * jax.lax.rsqrt(ms + EPS) * nw_ref[...].astype(jnp.float32)
        xn_ref[...] = xn.astype(xn_ref.dtype)

    h = jnp.dot(xn_ref[...], w1_ref[...], preferred_element_type=jnp.float32)
    h = h + b1_ref[...].astype(jnp.float32)
    h = h * jax.nn.sigmoid(h)                                 # SiLU in f32
    acc_ref[...] += jnp.dot(h.astype(w2_ref.dtype), w2_ref[...],
                            preferred_element_type=jnp.float32)

    @pl.when(j == pl.num_programs(1) - 1)
    def _():
        o_ref[...] = acc_ref[...].astype(o_ref.dtype)


def fused_norm_mlp(x, norm_w, w1, b1, w2, b2):
    m, e = x.shape
    hdim = w1.shape[1]
    tm = _pick_tile(m, TM_TARGET, 8)
    th = _pick_tile(hdim, TH_TARGET, 128)
    grid = (m // tm, hdim // th)
    return pl.pallas_call(
        _norm_mlp_kernel,
        grid=grid,
        in_specs=[
            pl.BlockSpec((tm, e), lambda i, j: (i, 0)),   # x (norm input + residual)
            pl.BlockSpec((1, e), lambda i, j: (0, 0)),    # norm weight
            pl.BlockSpec((e, th), lambda i, j: (0, j)),   # w1 hidden tile (bf16)
            pl.BlockSpec((1, th), lambda i, j: (0, j)),   # b1 hidden tile
            pl.BlockSpec((th, e), lambda i, j: (j, 0)),   # w2 hidden tile (bf16)
            pl.BlockSpec((1, e), lambda i, j: (0, 0)),    # b2
        ],
        out_specs=pl.BlockSpec((tm, e), lambda i, j: (i, 0)),
        out_shape=jax.ShapeDtypeStruct((m, e), x.dtype),
        scratch_shapes=[pltpu.VMEM((tm, e), jnp.float32),   # accumulator
                        pltpu.VMEM((tm, e), w1.dtype)],     # cached normalized slab
        compiler_params=pltpu.CompilerParams(
            dimension_semantics=("parallel", "arbitrary"),
            vmem_limit_bytes=VMEM_LIMIT),
    )(x, norm_w, w1, b1, w2, b2)


# ---------------------------------------------------------------------------
# Kernel 4: multi-head attention. Grid (B, Lq-tiles). q is [B, Lq, E] (bf16,
# scale already folded into the Q projection weights); kv is [B, Lk, 2E]
# (bf16, K columns then V columns). Head slices feed the MXU in bf16 directly;
# per-head outputs land in a (tq, E) f32 VMEM scratch; one lane-dense store.
# NOTE: not flash-style — the per-head [tq, Lk] scores live in VMEM, fine for
# this module's token / cond lengths.
# TODO(synk): for very long Lk an online-softmax sweep over Lk tiles would be
# needed to bound VMEM (especially on v7x).
# ---------------------------------------------------------------------------
def _attn_kernel(q_ref, kv_ref, o_ref, o_acc, *, num_heads):
    e = q_ref.shape[-1]
    dh = e // num_heads
    q = q_ref[0]      # (tq, E)  bf16, no upcast
    kv = kv_ref[0]    # (Lk, 2E) bf16, no upcast
    for h in range(num_heads):
        qh = q[:, h * dh:(h + 1) * dh]
        kh = kv[:, h * dh:(h + 1) * dh]
        vh = kv[:, e + h * dh:e + (h + 1) * dh]
        s = jax.lax.dot_general(qh, kh, (((1,), (1,)), ((), ())),
                                preferred_element_type=jnp.float32)
        m = jnp.max(s, axis=-1, keepdims=True)
        p = jnp.exp(s - m)
        p = p * pl.reciprocal(jnp.sum(p, axis=-1, keepdims=True), approx=True)
        o_acc[:, h * dh:(h + 1) * dh] = jnp.dot(
            p.astype(q.dtype), vh, preferred_element_type=jnp.float32)
    o_ref[0] = o_acc[...].astype(o_ref.dtype)


def attention(q, kv, num_heads):
    b, lq, e = q.shape
    lk = kv.shape[1]
    tq = _pick_tile(lq, TQ_TARGET, 8)
    grid = (b, lq // tq)
    kern = functools.partial(_attn_kernel, num_heads=num_heads)
    return pl.pallas_call(
        kern,
        grid=grid,
        in_specs=[
            pl.BlockSpec((1, tq, e), lambda i, qi: (i, qi, 0)),
            pl.BlockSpec((1, lk, 2 * e), lambda i, qi: (i, 0, 0)),
        ],
        out_specs=pl.BlockSpec((1, tq, e), lambda i, qi: (i, qi, 0)),
        out_shape=jax.ShapeDtypeStruct((b, lq, e), q.dtype),
        scratch_shapes=[pltpu.VMEM((tq, e), jnp.float32)],
        compiler_params=pltpu.CompilerParams(
            dimension_semantics=("parallel", "parallel"),
            vmem_limit_bytes=VMEM_LIMIT),
    )(q, kv)


# ---------------------------------------------------------------------------
# Model forward (only metadata reshapes between kernels; residual stream f32)
# ---------------------------------------------------------------------------
def transformer_forward(params, hidden_states, encoder_hidden_states, num_heads):
    b, l, c = hidden_states.shape
    lc = encoder_hidden_states.shape[1]
    e = params["proj_in_w"].shape[1]
    bf16 = jnp.bfloat16

    x2d_res = hidden_states.reshape(b * l, c)                     # f32 residual
    cond2d = encoder_hidden_states.reshape(b * lc, -1).astype(bf16)

    # top-level RMSNorm fused into proj_in
    x = fused_norm_matmul(x2d_res, params["norm_w"],
                          params["proj_in_w"], b=params["proj_in_b"])

    for blk in params["blocks"]:
        # ---- cross attention: norm1 fused into Q proj (scale folded into wq);
        #      K/V fused into one [Dk, 2E] matmul
        q = fused_norm_matmul(x, blk["norm1_w"], blk["ca_wq"], out_dtype=bf16)
        kv = matmul_bias_res(cond2d, blk["ca_wkv"], out_dtype=bf16)
        ao = attention(q.reshape(b, l, e), kv.reshape(b, lc, 2 * e), num_heads)
        x = matmul_bias_res(ao.reshape(b * l, e), blk["ca_wo"],
                            res=x, out_dtype=jnp.float32)

        # ---- self attention: norm2 fused into Q and KV projections
        q = fused_norm_matmul(x, blk["norm2_w"], blk["sa_wq"], out_dtype=bf16)
        kv = fused_norm_matmul(x, blk["norm2_w"], blk["sa_wkv"], out_dtype=bf16)
        ao = attention(q.reshape(b, l, e), kv.reshape(b, l, 2 * e), num_heads)
        x = matmul_bias_res(ao.reshape(b * l, e), blk["sa_wo"],
                            res=x, out_dtype=jnp.float32)

        # ---- MLP: norm3 + Linear + SiLU + Linear + residual, one kernel
        x = fused_norm_mlp(x, blk["norm3_w"], blk["mlp_w1"], blk["mlp_b1"],
                           blk["mlp_w2"], blk["mlp_b2"])

    # proj_out fused with the outermost residual add
    out = matmul_bias_res(x, params["proj_out_w"], b=params["proj_out_b"],
                          res=x2d_res, out_dtype=jnp.float32)
    return out.reshape(b, l, c)


# ---------------------------------------------------------------------------
# Deterministic parameter init (shapes follow the module __init__) + packing
# ---------------------------------------------------------------------------
def init_params(key, in_channels, inner_dim, cond_dim, num_layers):
    def w(key, shape, scale=0.02):
        return scale * jax.random.normal(key, shape, dtype=jnp.float32)

    keys = iter(jax.random.split(key, 8 + num_layers * 16))
    params = {
        "norm_w": jnp.ones((1, in_channels), jnp.float32),
        "proj_in_w": w(next(keys), (in_channels, inner_dim)),
        "proj_in_b": w(next(keys), (1, inner_dim)),
        "proj_out_w": w(next(keys), (inner_dim, in_channels)),
        "proj_out_b": w(next(keys), (1, in_channels)),
        "blocks": [],
    }
    hid = 4 * inner_dim
    for _ in range(num_layers):
        blk = {
            "norm1_w": jnp.ones((1, inner_dim), jnp.float32),
            "ca_wq": w(next(keys), (inner_dim, inner_dim)),
            "ca_wk": w(next(keys), (cond_dim, inner_dim)),
            "ca_wv": w(next(keys), (cond_dim, inner_dim)),
            "ca_wo": w(next(keys), (inner_dim, inner_dim)),
            "norm2_w": jnp.ones((1, inner_dim), jnp.float32),
            "sa_wq": w(next(keys), (inner_dim, inner_dim)),
            "sa_wk": w(next(keys), (inner_dim, inner_dim)),
            "sa_wv": w(next(keys), (inner_dim, inner_dim)),
            "sa_wo": w(next(keys), (inner_dim, inner_dim)),
            "norm3_w": jnp.ones((1, inner_dim), jnp.float32),
            "mlp_w1": w(next(keys), (inner_dim, hid)),
            "mlp_b1": w(next(keys), (1, hid)),
            "mlp_w2": w(next(keys), (hid, inner_dim)),
            "mlp_b2": w(next(keys), (1, inner_dim)),
        }
        params["blocks"].append(blk)
    return params


def pack_params(params, num_heads):
    """Kernel-side weights: bf16 MXU operands, fused K/V projections, and the
    1/sqrt(head_dim) attention scale folded into the Q projection columns.
    Norm weights and biases stay f32 (used only in f32 epilogues)."""
    # TODO(synk): optional int8 (v5e/v6e) / fp8 (v7x) weight quantization of the
    # large projections was not implemented; bf16 packing only.
    bf16 = jnp.bfloat16
    inner_dim = params["proj_in_w"].shape[1]
    scale = 1.0 / math.sqrt(inner_dim // num_heads)

    packed = {
        "norm_w": params["norm_w"],
        "proj_in_w": params["proj_in_w"].astype(bf16),
        "proj_in_b": params["proj_in_b"],
        "proj_out_w": params["proj_out_w"].astype(bf16),
        "proj_out_b": params["proj_out_b"],
        "blocks": [],
    }
    for blk in params["blocks"]:
        packed["blocks"].append({
            "norm1_w": blk["norm1_w"],
            "ca_wq": (blk["ca_wq"] * scale).astype(bf16),
            "ca_wkv": jnp.concatenate([blk["ca_wk"], blk["ca_wv"]], axis=1).astype(bf16),
            "ca_wo": blk["ca_wo"].astype(bf16),
            "norm2_w": blk["norm2_w"],
            "sa_wq": (blk["sa_wq"] * scale).astype(bf16),
            "sa_wkv": jnp.concatenate([blk["sa_wk"], blk["sa_wv"]], axis=1).astype(bf16),
            "sa_wo": blk["sa_wo"].astype(bf16),
            "norm3_w": blk["norm3_w"],
            "mlp_w1": blk["mlp_w1"].astype(bf16),
            "mlp_b1": blk["mlp_b1"],
            "mlp_w2": blk["mlp_w2"].astype(bf16),
            "mlp_b2": blk["mlp_b2"],
        })
    return packed


# ---------------------------------------------------------------------------
# Pure-JAX f32 reference (numerical sanity check of the kernels)
# ---------------------------------------------------------------------------
def ref_forward(params, hs, ehs, num_heads):
    def rms(x, w):
        xf = x.astype(jnp.float32)
        ms = jnp.mean(xf * xf, axis=-1, keepdims=True)
        return (xf * jax.lax.rsqrt(ms + EPS)).astype(x.dtype) * w[0]

    def mha(q_in, kv_in, wq, wk, wv, wo):
        b, lq, e = q_in.shape
        lk = kv_in.shape[1]
        dh = e // num_heads
        q = (q_in @ wq).reshape(b, lq, num_heads, dh).transpose(0, 2, 1, 3)
        k = (kv_in @ wk).reshape(b, lk, num_heads, dh).transpose(0, 2, 1, 3)
        v = (kv_in @ wv).reshape(b, lk, num_heads, dh).transpose(0, 2, 1, 3)
        s = jnp.einsum("bhqd,bhkd->bhqk", q, k) / (dh ** 0.5)
        p = jax.nn.softmax(s, axis=-1)
        o = jnp.einsum("bhqk,bhkd->bhqd", p, v).transpose(0, 2, 1, 3).reshape(b, lq, e)
        return o @ wo

    residual = hs
    x = rms(hs, params["norm_w"]) @ params["proj_in_w"] + params["proj_in_b"][0]
    for blk in params["blocks"]:
        x = x + mha(rms(x, blk["norm1_w"]), ehs,
                    blk["ca_wq"], blk["ca_wk"], blk["ca_wv"], blk["ca_wo"])
        xn = rms(x, blk["norm2_w"])
        x = x + mha(xn, xn, blk["sa_wq"], blk["sa_wk"], blk["sa_wv"], blk["sa_wo"])
        xn = rms(x, blk["norm3_w"])
        h = xn @ blk["mlp_w1"] + blk["mlp_b1"][0]
        h = h * jax.nn.sigmoid(h)
        x = x + (h @ blk["mlp_w2"] + blk["mlp_b2"][0])
    x = x @ params["proj_out_w"] + params["proj_out_b"][0]
    return x + residual


# TODO(synk): dropout layers (attn_drop / mlp_drop, both 0.0 here) are identity
# in eval mode and are intentionally not implemented as stochastic kernels.

if __name__ == "__main__":
    # Small shapes consistent with the module: inner_dim = heads * head_dim.
    B, L, Lc = 2, 8, 8
    in_channels = 64
    num_heads = 4
    head_dim = 8
    inner_dim = num_heads * head_dim      # 32
    cond_dim = 32
    num_layers = 2

    key = jax.random.PRNGKey(0)
    k_p, k_x, k_c = jax.random.split(key, 3)
    params = init_params(k_p, in_channels, inner_dim, cond_dim, num_layers)
    packed = pack_params(params, num_heads)
    hidden_states = jax.random.normal(k_x, (B, L, in_channels), dtype=jnp.float32)
    encoder_hidden_states = jax.random.normal(k_c, (B, Lc, cond_dim), dtype=jnp.float32)

    fwd = jax.jit(transformer_forward, static_argnums=(3,))
    out = jax.block_until_ready(
        fwd(packed, hidden_states, encoder_hidden_states, num_heads))

    ref = jax.block_until_ready(
        ref_forward(params, hidden_states, encoder_hidden_states, num_heads))
    assert out.shape == (B, L, in_channels)
    max_err = float(jnp.max(jnp.abs(out - ref)))
    # bf16 MXU operands + approx-reciprocal softmax -> looser tolerance vs f32 ref
    assert jnp.allclose(out, ref, atol=2e-2, rtol=2e-2), (
        f"mismatch vs JAX reference (max abs err {max_err})")

    print("KERNEL_OK")
</pallas_src>

<mosaic_0001>
module attributes {stable_mosaic.version = 11 : i64} {
  func.func @_matmul_bias_res_kernel(%arg0: i32, %arg1: i32, %arg2: i32, %arg3: memref<16x32xbf16, #tpu.memory_space<vmem>>, %arg4: memref<32x64xbf16, #tpu.memory_space<vmem>>, %arg5: memref<16x64xbf16, #tpu.memory_space<vmem>>, %arg6: memref<16x64xf32, #tpu.memory_space<vmem>>) attributes {dimension_semantics = [#tpu.dimension_semantics<parallel>, #tpu.dimension_semantics<parallel>, #tpu.dimension_semantics<arbitrary>], iteration_bounds = array<i64: 1, 1, 1>, scalar_prefetch = 0 : i64, scratch_operands = 1 : i64, tpu.core_type = #tpu.core_type<tc>, window_params = [{transform_indices = @transform_0, window_bounds = array<i64: 16, 32>}, {transform_indices = @transform_1, window_bounds = array<i64: 32, 64>}, {transform_indices = @transform_2, window_bounds = array<i64: 16, 64>}]} {
    %c0_i32 = arith.constant 0 : i32
    %0 = arith.cmpi eq, %arg2, %c0_i32 : i32
    %1 = arith.extui %0 : i1 to i32
    %c0_i32_0 = arith.constant 0 : i32
    %2 = arith.cmpi ne, %1, %c0_i32_0 : i32
    scf.if %2 {
      %cst_10 = arith.constant 0.000000e+00 : f32
      %12 = vector.broadcast %cst_10 : f32 to vector<16x64xf32>
      %c0_11 = arith.constant 0 : index
      %c0_12 = arith.constant 0 : index
      %13 = vector.load %arg6[%c0_11, %c0_12] : memref<16x64xf32, #tpu.memory_space<vmem>>, vector<16x64xf32>
      tpu.vector_store %arg6[%c0_11, %c0_12], %12 {strides = array<i32>} : memref<16x64xf32, #tpu.memory_space<vmem>>, vector<16x64xf32>,
    } else {
    }
    %c0 = arith.constant 0 : index
    %c0_1 = arith.constant 0 : index
    %3 = vector.load %arg6[%c0, %c0_1] : memref<16x64xf32, #tpu.memory_space<vmem>>, vector<16x64xf32>
    %c0_2 = arith.constant 0 : index
    %c0_3 = arith.constant 0 : index
    %4 = vector.load %arg3[%c0_2, %c0_3] : memref<16x32xbf16, #tpu.memory_space<vmem>>, vector<16x32xbf16>
    %c0_4 = arith.constant 0 : index
    %c0_5 = arith.constant 0 : index
    %5 = vector.load %arg4[%c0_4, %c0_5] : memref<32x64xbf16, #tpu.memory_space<vmem>>, vector<32x64xbf16>
    %cst = arith.constant dense<0.000000e+00> : vector<16x64xf32>
    %6 = tpu.matmul %4, %5, %cst {dimension_numbers = #tpu.dot_dimension_numbers<[1], [0], [0], [1], [0, 0, 1, 1], [], []>} : vector<16x32xbf16>, vector<32x64xbf16>, vector<16x64xf32> -> vector<16x64xf32>
    %7 = arith.addf %3, %6 : vector<16x64xf32>
    %c0_6 = arith.constant 0 : index
    %c0_7 = arith.constant 0 : index
    %8 = vector.load %arg6[%c0_6, %c0_7] : memref<16x64xf32, #tpu.memory_space<vmem>>, vector<16x64xf32>
    tpu.vector_store %arg6[%c0_6, %c0_7], %7 {strides = array<i32>} : memref<16x64xf32, #tpu.memory_space<vmem>>, vector<16x64xf32>,
    %c0_i32_8 = arith.constant 0 : i32
    %9 = arith.cmpi eq, %arg2, %c0_i32_8 : i32
    %10 = arith.extui %9 : i1 to i32
    %c0_i32_9 = arith.constant 0 : i32
    %11 = arith.cmpi ne, %10, %c0_i32_9 : i32
    scf.if %11 {
      %c0_10 = arith.constant 0 : index
      %c0_11 = arith.constant 0 : index
      %12 = vector.load %arg6[%c0_10, %c0_11] : memref<16x64xf32, #tpu.memory_space<vmem>>, vector<16x64xf32>
      %13 = arith.truncf %12 : vector<16x64xf32> to vector<16x64xbf16>
      %c0_12 = arith.constant 0 : index
      %c0_13 = arith.constant 0 : index
      %14 = vector.load %arg5[%c0_12, %c0_13] : memref<16x64xbf16, #tpu.memory_space<vmem>>, vector<16x64xbf16>
      tpu.vector_store %arg5[%c0_12, %c0_13], %13 {strides = array<i32>} : memref<16x64xbf16, #tpu.memory_space<vmem>>, vector<16x64xbf16>,
    } else {
    }
    return
  }
  func.func @transform_0(%arg0: i32, %arg1: i32, %arg2: i32) -> (i32, i32) {
    %c0_i32 = arith.constant 0 : i32
    return %arg0, %arg2 : i32, i32
  }
  func.func @transform_1(%arg0: i32, %arg1: i32, %arg2: i32) -> (i32, i32) {
    %c0_i32 = arith.constant 0 : i32
    return %arg2, %arg1 : i32, i32
  }
  func.func @transform_2(%arg0: i32, %arg1: i32, %arg2: i32) -> (i32, i32) {
    %c0_i32 = arith.constant 0 : i32
    return %arg0, %arg1 : i32, i32
  }
}

module attributes {stable_mosaic.version = 11 : i64} {
  func.func @_norm_matmul_kernel(%arg0: i32, %arg1: i32, %arg2: memref<16x64xf32, #tpu.memory_space<vmem>>, %arg3: memref<1x64xf32, #tpu.memory_space<vmem>>, %arg4: memref<64x32xbf16, #tpu.memory_space<vmem>>, %arg5: memref<1x32xf32, #tpu.memory_space<vmem>>, %arg6: memref<16x32xf32, #tpu.memory_space<vmem>>, %arg7: memref<16x64xbf16, #tpu.memory_space<vmem>>) attributes {dimension_semantics = [#tpu.dimension_semantics<parallel>, #tpu.dimension_semantics<arbitrary>], iteration_bounds = array<i64: 1, 1>, scalar_prefetch = 0 : i64, scratch_operands = 1 : i64, tpu.core_type = #tpu.core_type<tc>, window_params = [{transform_indices = @transform_0, window_bounds = array<i64: 16, 64>}, {pipeline_mode = #tpu.pipeline_mode<synchronous>, transform_indices = @transform_1, window_bounds = array<i64: 1, 64>}, {transform_indices = @transform_2, window_bounds = array<i64: 64, 32>}, {transform_indices = @transform_3, window_bounds = array<i64: 1, 32>}, {transform_indices = @transform_4, window_bounds = array<i64: 16, 32>}]} {
    %c0_i32 = arith.constant 0 : i32
    %0 = arith.cmpi eq, %arg1, %c0_i32 : i32
    %1 = arith.extui %0 : i1 to i32
    %c0_i32_0 = arith.constant 0 : i32
    %2 = arith.cmpi ne, %1, %c0_i32_0 : i32
    scf.if %2 {
      %c0_8 = arith.constant 0 : index
      %c0_9 = arith.constant 0 : index
      %10 = vector.load %arg2[%c0_8, %c0_9] : memref<16x64xf32, #tpu.memory_space<vmem>>, vector<16x64xf32>
      %11 = arith.mulf %10, %10 : vector<16x64xf32>
      %cst_10 = arith.constant dense<0.000000e+00> : vector<16xf32>
      %12 = vector.multi_reduction <add>, %11, %cst_10 [1] : vector<16x64xf32> to vector<16xf32>
      %13 = vector.shape_cast %12 : vector<16xf32> to vector<16x1xf32>
      %cst_11 = arith.constant 6.400000e+01 : f32
      %14 = vector.broadcast %cst_11 : f32 to vector<16x1xf32>
      %15 = arith.divf %13, %14 : vector<16x1xf32>
      %cst_12 = arith.constant 9.99999997E-7 : f32
      %16 = vector.broadcast %cst_12 : f32 to vector<16x1xf32>
      %17 = arith.addf %15, %16 : vector<16x1xf32>
      %18 = math.rsqrt %17 : vector<16x1xf32>
      %19 = vector.broadcast %18 : vector<16x1xf32> to vector<16x64xf32>
      %20 = arith.mulf %10, %19 : vector<16x64xf32>
      %c0_13 = arith.constant 0 : index
      %c0_14 = arith.constant 0 : index
      %21 = vector.load %arg3[%c0_13, %c0_14] : memref<1x64xf32, #tpu.memory_space<vmem>>, vector<1x64xf32>
      %22 = vector.broadcast %21 : vector<1x64xf32> to vector<16x64xf32>
      %23 = arith.mulf %20, %22 : vector<16x64xf32>
      %24 = arith.truncf %23 : vector<16x64xf32> to vector<16x64xbf16>
      %c0_15 = arith.constant 0 : index
      %c0_16 = arith.constant 0 : index
      %25 = vector.load %arg7[%c0_15, %c0_16] : memref<16x64xbf16, #tpu.memory_space<vmem>>, vector<16x64xbf16>
      tpu.vector_store %arg7[%c0_15, %c0_16], %24 {strides = array<i32>} : memref<16x64xbf16, #tpu.memory_space<vmem>>, vector<16x64xbf16>,
    } else {
    }
    %c0 = arith.constant 0 : index
    %c0_1 = arith.constant 0 : index
    %3 = vector.load %arg7[%c0, %c0_1] : memref<16x64xbf16, #tpu.memory_space<vmem>>, vector<16x64xbf16>
    %c0_2 = arith.constant 0 : index
    %c0_3 = arith.constant 0 : index
    %4 = vector.load %arg4[%c0_2, %c0_3] : memref<64x32xbf16, #tpu.memory_space<vmem>>, vector<64x32xbf16>
    %cst = arith.constant dense<0.000000e+00> : vector<16x32xf32>
    %5 = tpu.matmul %3, %4, %cst {dimension_numbers = #tpu.dot_dimension_numbers<[1], [0], [0], [1], [0, 0, 1, 1], [], []>} : vector<16x64xbf16>, vector<64x32xbf16>, vector<16x32xf32> -> vector<16x32xf32>
    %c0_4 = arith.constant 0 : index
    %c0_5 = arith.constant 0 : index
    %6 = vector.load %arg5[%c0_4, %c0_5] : memref<1x32xf32, #tpu.memory_space<vmem>>, vector<1x32xf32>
    %7 = vector.broadcast %6 : vector<1x32xf32> to vector<16x32xf32>
    %8 = arith.addf %5, %7 : vector<16x32xf32>
    %c0_6 = arith.constant 0 : index
    %c0_7 = arith.constant 0 : index
    %9 = vector.load %arg6[%c0_6, %c0_7] : memref<16x32xf32, #tpu.memory_space<vmem>>, vector<16x32xf32>
    tpu.vector_store %arg6[%c0_6, %c0_7], %8 {strides = array<i32>} : memref<16x32xf32, #tpu.memory_space<vmem>>, vector<16x32xf32>,
    return
  }
  func.func @transform_0(%arg0: i32, %arg1: i32) -> (i32, i32) {
    %c0_i32 = arith.constant 0 : i32
    %c0_i32_0 = arith.constant 0 : i32
    return %arg0, %c0_i32 : i32, i32
  }
  func.func @transform_1(%arg0: i32, %arg1: i32) -> (i32, i32) {
    %c0_i32 = arith.constant 0 : i32
    %c0_i32_0 = arith.constant 0 : i32
    %c0_i32_1 = arith.constant 0 : i32
    return %c0_i32, %c0_i32_0 : i32, i32
  }
  func.func @transform_2(%arg0: i32, %arg1: i32) -> (i32, i32) {
    %c0_i32 = arith.constant 0 : i32
    %c0_i32_0 = arith.constant 0 : i32
    return %c0_i32, %arg1 : i32, i32
  }
  func.func @transform_3(%arg0: i32, %arg1: i32) -> (i32, i32) {
    %c0_i32 = arith.constant 0 : i32
    %c0_i32_0 = arith.constant 0 : i32
    return %c0_i32, %arg1 : i32, i32
  }
  func.func @transform_4(%arg0: i32, %arg1: i32) -> (i32, i32) {
    %c0_i32 = arith.constant 0 : i32
    return %arg0, %arg1 : i32, i32
  }
}

module attributes {stable_mosaic.version = 11 : i64} {
  func.func @_norm_matmul_kernel(%arg0: i32, %arg1: i32, %arg2: memref<16x32xf32, #tpu.memory_space<vmem>>, %arg3: memref<1x32xf32, #tpu.memory_space<vmem>>, %arg4: memref<32x32xbf16, #tpu.memory_space<vmem>>, %arg5: memref<16x32xbf16, #tpu.memory_space<vmem>>, %arg6: memref<16x32xbf16, #tpu.memory_space<vmem>>) attributes {dimension_semantics = [#tpu.dimension_semantics<parallel>, #tpu.dimension_semantics<arbitrary>], iteration_bounds = array<i64: 1, 1>, scalar_prefetch = 0 : i64, scratch_operands = 1 : i64, tpu.core_type = #tpu.core_type<tc>, window_params = [{transform_indices = @transform_0, window_bounds = array<i64: 16, 32>}, {pipeline_mode = #tpu.pipeline_mode<synchronous>, transform_indices = @transform_1, window_bounds = array<i64: 1, 32>}, {transform_indices = @transform_2, window_bounds = array<i64: 32, 32>}, {transform_indices = @transform_3, window_bounds = array<i64: 16, 32>}]} {
    %c0_i32 = arith.constant 0 : i32
    %0 = arith.cmpi eq, %arg1, %c0_i32 : i32
    %1 = arith.extui %0 : i1 to i32
    %c0_i32_0 = arith.constant 0 : i32
    %2 = arith.cmpi ne, %1, %c0_i32_0 : i32
    scf.if %2 {
      %c0_6 = arith.constant 0 : index
      %c0_7 = arith.constant 0 : index
      %8 = vector.load %arg2[%c0_6, %c0_7] : memref<16x32xf32, #tpu.memory_space<vmem>>, vector<16x32xf32>
      %9 = arith.mulf %8, %8 : vector<16x32xf32>
      %cst_8 = arith.constant dense<0.000000e+00> : vector<16xf32>
      %10 = vector.multi_reduction <add>, %9, %cst_8 [1] : vector<16x32xf32> to vector<16xf32>
      %11 = vector.shape_cast %10 : vector<16xf32> to vector<16x1xf32>
      %cst_9 = arith.constant 3.200000e+01 : f32
      %12 = vector.broadcast %cst_9 : f32 to vector<16x1xf32>
      %13 = arith.divf %11, %12 : vector<16x1xf32>
      %cst_10 = arith.constant 9.99999997E-7 : f32
      %14 = vector.broadcast %cst_10 : f32 to vector<16x1xf32>
      %15 = arith.addf %13, %14 : vector<16x1xf32>
      %16 = math.rsqrt %15 : vector<16x1xf32>
      %17 = vector.broadcast %16 : vector<16x1xf32> to vector<16x32xf32>
      %18 = arith.mulf %8, %17 : vector<16x32xf32>
      %c0_11 = arith.constant 0 : index
      %c0_12 = arith.constant 0 : index
      %19 = vector.load %arg3[%c0_11, %c0_12] : memref<1x32xf32, #tpu.memory_space<vmem>>, vector<1x32xf32>
      %20 = vector.broadcast %19 : vector<1x32xf32> to vector<16x32xf32>
      %21 = arith.mulf %18, %20 : vector<16x32xf32>
      %22 = arith.truncf %21 : vector<16x32xf32> to vector<16x32xbf16>
      %c0_13 = arith.constant 0 : index
      %c0_14 = arith.constant 0 : index
      %23 = vector.load %arg6[%c0_13, %c0_14] : memref<16x32xbf16, #tpu.memory_space<vmem>>, vector<16x32xbf16>
      tpu.vector_store %arg6[%c0_13, %c0_14], %22 {strides = array<i32>} : memref<16x32xbf16, #tpu.memory_space<vmem>>, vector<16x32xbf16>,
    } else {
    }
    %c0 = arith.constant 0 : index
    %c0_1 = arith.constant 0 : index
    %3 = vector.load %arg6[%c0, %c0_1] : memref<16x32xbf16, #tpu.memory_space<vmem>>, vector<16x32xbf16>
    %c0_2 = arith.constant 0 : index
    %c0_3 = arith.constant 0 : index
    %4 = vector.load %arg4[%c0_2, %c0_3] : memref<32x32xbf16, #tpu.memory_space<vmem>>, vector<32x32xbf16>
    %cst = arith.constant dense<0.000000e+00> : vector<16x32xf32>
    %5 = tpu.matmul %3, %4, %cst {dimension_numbers = #tpu.dot_dimension_numbers<[1], [0], [0], [1], [0, 0, 1, 1], [], []>} : vector<16x32xbf16>, vector<32x32xbf16>, vector<16x32xf32> -> vector<16x32xf32>
    %6 = arith.truncf %5 : vector<16x32xf32> to vector<16x32xbf16>
    %c0_4 = arith.constant 0 : index
    %c0_5 = arith.constant 0 : index
    %7 = vector.load %arg5[%c0_4, %c0_5] : memref<16x32xbf16, #tpu.memory_space<vmem>>, vector<16x32xbf16>
    tpu.vector_store %arg5[%c0_4, %c0_5], %6 {strides = array<i32>} : memref<16x32xbf16, #tpu.memory_space<vmem>>, vector<16x32xbf16>,
    return
  }
  func.func @transform_0(%arg0: i32, %arg1: i32) -> (i32, i32) {
    %c0_i32 = arith.constant 0 : i32
    %c0_i32_0 = arith.constant 0 : i32
    return %arg0, %c0_i32 : i32, i32
  }
  func.func @transform_1(%arg0: i32, %arg1: i32) -> (i32, i32) {
    %c0_i32 = arith.constant 0 : i32
    %c0_i32_0 = arith.constant 0 : i32
    %c0_i32_1 = arith.constant 0 : i32
    return %c0_i32, %c0_i32_0 : i32, i32
  }
  func.func @transform_2(%arg0: i32, %arg1: i32) -> (i32, i32) {
    %c0_i32 = arith.constant 0 : i32
    %c0_i32_0 = arith.constant 0 : i32
    return %c0_i32, %arg1 : i32, i32
  }
  func.func @transform_3(%arg0: i32, %arg1: i32) -> (i32, i32) {
    %c0_i32 = arith.constant 0 : i32
    return %arg0, %arg1 : i32, i32
  }
}

module attributes {stable_mosaic.version = 11 : i64} {
  func.func @_attn_kernel(%arg0: i32, %arg1: i32, %arg2: memref<1x8x32xbf16, #tpu.memory_space<vmem>>, %arg3: memref<1x8x64xbf16, #tpu.memory_space<vmem>>, %arg4: memref<1x8x32xbf16, #tpu.memory_space<vmem>>, %arg5: memref<8x32xf32, #tpu.memory_space<vmem>>) attributes {dimension_semantics = [#tpu.dimension_semantics<parallel>, #tpu.dimension_semantics<parallel>], iteration_bounds = array<i64: 2, 1>, scalar_prefetch = 0 : i64, scratch_operands = 1 : i64, tpu.core_type = #tpu.core_type<tc>, window_params = [{transform_indices = @transform_0, window_bounds = array<i64: 1, 8, 32>}, {transform_indices = @transform_1, window_bounds = array<i64: 1, 8, 64>}, {transform_indices = @transform_2, window_bounds = array<i64: 1, 8, 32>}]} {
    %c0 = arith.constant 0 : index
    %c0_0 = arith.constant 0 : index
    %c0_1 = arith.constant 0 : index
    %0 = vector.load %arg2[%c0, %c0_0, %c0_1] : memref<1x8x32xbf16, #tpu.memory_space<vmem>>, vector<1x8x32xbf16>
    %1 = vector.shape_cast %0 : vector<1x8x32xbf16> to vector<8x32xbf16>
    %c0_2 = arith.constant 0 : index
    %c0_3 = arith.constant 0 : index
    %c0_4 = arith.constant 0 : index
    %2 = vector.load %arg3[%c0_2, %c0_3, %c0_4] : memref<1x8x64xbf16, #tpu.memory_space<vmem>>, vector<1x8x64xbf16>
    %3 = vector.shape_cast %2 : vector<1x8x64xbf16> to vector<8x64xbf16>
    %4 = vector.extract_strided_slice %1 {offsets = [0, 0], sizes = [8, 8], strides = [1, 1]} : vector<8x32xbf16> to vector<8x8xbf16>
    %5 = vector.extract_strided_slice %3 {offsets = [0, 0], sizes = [8, 8], strides = [1, 1]} : vector<8x64xbf16> to vector<8x8xbf16>
    %6 = vector.extract_strided_slice %3 {offsets = [0, 32], sizes = [8, 8], strides = [1, 1]} : vector<8x64xbf16> to vector<8x8xbf16>
    %cst = arith.constant dense<0.000000e+00> : vector<8x8xf32>
    %7 = tpu.matmul %4, %5, %cst {dimension_numbers = #tpu.dot_dimension_numbers<[1], [1], [0], [0], [0, 0, 1, 0], [], []>} : vector<8x8xbf16>, vector<8x8xbf16>, vector<8x8xf32> -> vector<8x8xf32>
    %cst_5 = arith.constant dense<0xFF800000> : vector<8xf32>
    %8 = vector.multi_reduction <maximumf>, %7, %cst_5 [1] : vector<8x8xf32> to vector<8xf32>
    %9 = vector.shape_cast %8 : vector<8xf32> to vector<8x1xf32>
    %10 = vector.broadcast %9 : vector<8x1xf32> to vector<8x8xf32>
    %11 = arith.subf %7, %10 : vector<8x8xf32>
    %12 = math.exp %11 : vector<8x8xf32>
    %cst_6 = arith.constant dense<0.000000e+00> : vector<8xf32>
    %13 = vector.multi_reduction <add>, %12, %cst_6 [1] : vector<8x8xf32> to vector<8xf32>
    %14 = vector.shape_cast %13 : vector<8xf32> to vector<8x1xf32>
    %15 = tpu.reciprocal %14 {approx = true} : vector<8x1xf32> -> vector<8x1xf32>
    %16 = vector.broadcast %15 : vector<8x1xf32> to vector<8x8xf32>
    %17 = arith.mulf %12, %16 : vector<8x8xf32>
    %18 = arith.truncf %17 : vector<8x8xf32> to vector<8x8xbf16>
    %cst_7 = arith.constant dense<0.000000e+00> : vector<8x8xf32>
    %19 = tpu.matmul %18, %6, %cst_7 {dimension_numbers = #tpu.dot_dimension_numbers<[1], [0], [0], [1], [0, 0, 1, 1], [], []>} : vector<8x8xbf16>, vector<8x8xbf16>, vector<8x8xf32> -> vector<8x8xf32>
    %c0_8 = arith.constant 0 : index
    %c0_9 = arith.constant 0 : index
    %20 = vector.load %arg5[%c0_8, %c0_9] : memref<8x32xf32, #tpu.memory_space<vmem>>, vector<8x8xf32>
    tpu.vector_store %arg5[%c0_8, %c0_9], %19 {strides = array<i32>} : memref<8x32xf32, #tpu.memory_space<vmem>>, vector<8x8xf32>,
    %21 = vector.extract_strided_slice %1 {offsets = [0, 8], sizes = [8, 8], strides = [1, 1]} : vector<8x32xbf16> to vector<8x8xbf16>
    %22 = vector.extract_strided_slice %3 {offsets = [0, 8], sizes = [8, 8], strides = [1, 1]} : vector<8x64xbf16> to vector<8x8xbf16>
    %23 = vector.extract_strided_slice %3 {offsets = [0, 40], sizes = [8, 8], strides = [1, 1]} : vector<8x64xbf16> to vector<8x8xbf16>
    %cst_10 = arith.constant dense<0.000000e+00> : vector<8x8xf32>
    %24 = tpu.matmul %21, %22, %cst_10 {dimension_numbers = #tpu.dot_dimension_numbers<[1], [1], [0], [0], [0, 0, 1, 0], [], []>} : vector<8x8xbf16>, vector<8x8xbf16>, vector<8x8xf32> -> vector<8x8xf32>
    %cst_11 = arith.constant dense<0xFF800000> : vector<8xf32>
    %25 = vector.multi_reduction <maximumf>, %24, %cst_11 [1] : vector<8x8xf32> to vector<8xf32>
    %26 = vector.shape_cast %25 : vector<8xf32> to vector<8x1xf32>
    %27 = vector.broadcast %26 : vector<8x1xf32> to vector<8x8xf32>
    %28 = arith.subf %24, %27 : vector<8x8xf32>
    %29 = math.exp %28 : vector<8x8xf32>
    %cst_12 = arith.constant dense<0.000000e+00> : vector<8xf32>
    %30 = vector.multi_reduction <add>, %29, %cst_12 [1] : vector<8x8xf32> to vector<8xf32>
    %31 = vector.shape_cast %30 : vector<8xf32> to vector<8x1xf32>
    %32 = tpu.reciprocal %31 {approx = true} : vector<8x1xf32> -> vector<8x1xf32>
    %33 = vector.broadcast %32 : vector<8x1xf32> to vector<8x8xf32>
    %34 = arith.mulf %29, %33 : vector<8x8xf32>
    %35 = arith.truncf %34 : vector<8x8xf32> to vector<8x8xbf16>
    %cst_13 = arith.constant dense<0.000000e+00> : vector<8x8xf32>
    %36 = tpu.matmul %35, %23, %cst_13 {dimension_numbers = #tpu.dot_dimension_numbers<[1], [0], [0], [1], [0, 0, 1, 1], [], []>} : vector<8x8xbf16>, vector<8x8xbf16>, vector<8x8xf32> -> vector<8x8xf32>
    %c0_14 = arith.constant 0 : index
    %c8 = arith.constant 8 : index
    %37 = vector.load %arg5[%c0_14, %c8] : memref<8x32xf32, #tpu.memory_space<vmem>>, vector<8x8xf32>
    tpu.vector_store %arg5[%c0_14, %c8], %36 {strides = array<i32>} : memref<8x32xf32, #tpu.memory_space<vmem>>, vector<8x8xf32>,
    %38 = vector.extract_strided_slice %1 {offsets = [0, 16], sizes = [8, 8], strides = [1, 1]} : vector<8x32xbf16> to vector<8x8xbf16>
    %39 = vector.extract_strided_slice %3 {offsets = [0, 16], sizes = [8, 8], strides = [1, 1]} : vector<8x64xbf16> to vector<8x8xbf16>
    %40 = vector.extract_strided_slice %3 {offsets = [0, 48], sizes = [8, 8], strides = [1, 1]} : vector<8x64xbf16> to vector<8x8xbf16>
    %cst_15 = arith.constant dense<0.000000e+00> : vector<8x8xf32>
    %41 = tpu.matmul %38, %39, %cst_15 {dimension_numbers = #tpu.dot_dimension_numbers<[1], [1], [0], [0], [0, 0, 1, 0], [], []>} : vector<8x8xbf16>, vector<8x8xbf16>, vector<8x8xf32> -> vector<8x8xf32>
    %cst_16 = arith.constant dense<0xFF800000> : vector<8xf32>
    %42 = vector.multi_reduction <maximumf>, %41, %cst_16 [1] : vector<8x8xf32> to vector<8xf32>
    %43 = vector.shape_cast %42 : vector<8xf32> to vector<8x1xf32>
    %44 = vector.broadcast %43 : vector<8x1xf32> to vector<8x8xf32>
    %45 = arith.subf %41, %44 : vector<8x8xf32>
    %46 = math.exp %45 : vector<8x8xf32>
    %cst_17 = arith.constant dense<0.000000e+00> : vector<8xf32>
    %47 = vector.multi_reduction <add>, %46, %cst_17 [1] : vector<8x8xf32> to vector<8xf32>
    %48 = vector.shape_cast %47 : vector<8xf32> to vector<8x1xf32>
    %49 = tpu.reciprocal %48 {approx = true} : vector<8x1xf32> -> vector<8x1xf32>
    %50 = vector.broadcast %49 : vector<8x1xf32> to vector<8x8xf32>
    %51 = arith.mulf %46, %50 : vector<8x8xf32>
    %52 = arith.truncf %51 : vector<8x8xf32> to vector<8x8xbf16>
    %cst_18 = arith.constant dense<0.000000e+00> : vector<8x8xf32>
    %53 = tpu.matmul %52, %40, %cst_18 {dimension_numbers = #tpu.dot_dimension_numbers<[1], [0], [0], [1], [0, 0, 1, 1], [], []>} : vector<8x8xbf16>, vector<8x8xbf16>, vector<8x8xf32> -> vector<8x8xf32>
    %c0_19 = arith.constant 0 : index
    %c16 = arith.constant 16 : index
    %54 = vector.load %arg5[%c0_19, %c16] : memref<8x32xf32, #tpu.memory_space<vmem>>, vector<8x8xf32>
    tpu.vector_store %arg5[%c0_19, %c16], %53 {strides = array<i32>} : memref<8x32xf32, #tpu.memory_space<vmem>>, vector<8x8xf32>,
    %55 = vector.extract_strided_slice %1 {offsets = [0, 24], sizes = [8, 8], strides = [1, 1]} : vector<8x32xbf16> to vector<8x8xbf16>
    %56 = vector.extract_strided_slice %3 {offsets = [0, 24], sizes = [8, 8], strides = [1, 1]} : vector<8x64xbf16> to vector<8x8xbf16>
    %57 = vector.extract_strided_slice %3 {offsets = [0, 56], sizes = [8, 8], strides = [1, 1]} : vector<8x64xbf16> to vector<8x8xbf16>
    %cst_20 = arith.constant dense<0.000000e+00> : vector<8x8xf32>
    %58 = tpu.matmul %55, %56, %cst_20 {dimension_numbers = #tpu.dot_dimension_numbers<[1], [1], [0], [0], [0, 0, 1, 0], [], []>} : vector<8x8xbf16>, vector<8x8xbf16>, vector<8x8xf32> -> vector<8x8xf32>
    %cst_21 = arith.constant dense<0xFF800000> : vector<8xf32>
    %59 = vector.multi_reduction <maximumf>, %58, %cst_21 [1] : vector<8x8xf32> to vector<8xf32>
    %60 = vector.shape_cast %59 : vector<8xf32> to vector<8x1xf32>
    %61 = vector.broadcast %60 : vector<8x1xf32> to vector<8x8xf32>
    %62 = arith.subf %58, %61 : vector<8x8xf32>
    %63 = math.exp %62 : vector<8x8xf32>
    %cst_22 = arith.constant dense<0.000000e+00> : vector<8xf32>
    %64 = vector.multi_reduction <add>, %63, %cst_22 [1] : vector<8x8xf32> to vector<8xf32>
    %65 = vector.shape_cast %64 : vector<8xf32> to vector<8x1xf32>
    %66 = tpu.reciprocal %65 {approx = true} : vector<8x1xf32> -> vector<8x1xf32>
    %67 = vector.broadcast %66 : vector<8x1xf32> to vector<8x8xf32>
    %68 = arith.mulf %63, %67 : vector<8x8xf32>
    %69 = arith.truncf %68 : vector<8x8xf32> to vector<8x8xbf16>
    %cst_23 = arith.constant dense<0.000000e+00> : vector<8x8xf32>
    %70 = tpu.matmul %69, %57, %cst_23 {dimension_numbers = #tpu.dot_dimension_numbers<[1], [0], [0], [1], [0, 0, 1, 1], [], []>} : vector<8x8xbf16>, vector<8x8xbf16>, vector<8x8xf32> -> vector<8x8xf32>
    %c0_24 = arith.constant 0 : index
    %c24 = arith.constant 24 : index
    %71 = vector.load %arg5[%c0_24, %c24] : memref<8x32xf32, #tpu.memory_space<vmem>>, vector<8x8xf32>
    tpu.vector_store %arg5[%c0_24, %c24], %70 {strides = array<i32>} : memref<8x32xf32, #tpu.memory_space<vmem>>, vector<8x8xf32>,
    %c0_25 = arith.constant 0 : index
    %c0_26 = arith.constant 0 : index
    %72 = vector.load %arg5[%c0_25, %c0_26] : memref<8x32xf32, #tpu.memory_space<vmem>>, vector<8x32xf32>
    %73 = arith.truncf %72 : vector<8x32xf32> to vector<8x32xbf16>
    %c0_27 = arith.constant 0 : index
    %c0_28 = arith.constant 0 : index
    %c0_29 = arith.constant 0 : index
    %74 = vector.load %arg4[%c0_27, %c0_28, %c0_29] : memref<1x8x32xbf16, #tpu.memory_space<vmem>>, vector<1x8x32xbf16>
    %75 = vector.shape_cast %74 : vector<1x8x32xbf16> to vector<8x32xbf16>
    %76 = vector.shape_cast %73 : vector<8x32xbf16> to vector<1x8x32xbf16>
    tpu.vector_store %arg4[%c0_27, %c0_28, %c0_29], %76 {strides = array<i32>} : memref<1x8x32xbf16, #tpu.memory_space<vmem>>, vector<1x8x32xbf16>,
    return
  }
  func.func @transform_0(%arg0: i32, %arg1: i32) -> (i32, i32, i32) {
    %c0_i32 = arith.constant 0 : i32
    %c0_i32_0 = arith.constant 0 : i32
    return %arg0, %arg1, %c0_i32 : i32, i32, i32
  }
  func.func @transform_1(%arg0: i32, %arg1: i32) -> (i32, i32, i32) {
    %c0_i32 = arith.constant 0 : i32
    %c0_i32_0 = arith.constant 0 : i32
    %c0_i32_1 = arith.constant 0 : i32
    return %arg0, %c0_i32, %c0_i32_0 : i32, i32, i32
  }
  func.func @transform_2(%arg0: i32, %arg1: i32) -> (i32, i32, i32) {
    %c0_i32 = arith.constant 0 : i32
    %c0_i32_0 = arith.constant 0 : i32
    return %arg0, %arg1, %c0_i32 : i32, i32, i32
  }
}

module attributes {stable_mosaic.version = 11 : i64} {
  func.func @_matmul_bias_res_kernel(%arg0: i32, %arg1: i32, %arg2: i32, %arg3: memref<16x32xbf16, #tpu.memory_space<vmem>>, %arg4: memref<32x32xbf16, #tpu.memory_space<vmem>>, %arg5: memref<16x32xf32, #tpu.memory_space<vmem>>, %arg6: memref<16x32xf32, #tpu.memory_space<vmem>>, %arg7: memref<16x32xf32, #tpu.memory_space<vmem>>) attributes {dimension_semantics = [#tpu.dimension_semantics<parallel>, #tpu.dimension_semantics<parallel>, #tpu.dimension_semantics<arbitrary>], iteration_bounds = array<i64: 1, 1, 1>, scalar_prefetch = 0 : i64, scratch_operands = 1 : i64, tpu.core_type = #tpu.core_type<tc>, window_params = [{transform_indices = @transform_0, window_bounds = array<i64: 16, 32>}, {transform_indices = @transform_1, window_bounds = array<i64: 32, 32>}, {transform_indices = @transform_2, window_bounds = array<i64: 16, 32>}, {transform_indices = @transform_3, window_bounds = array<i64: 16, 32>}]} {
    %c0_i32 = arith.constant 0 : i32
    %0 = arith.cmpi eq, %arg2, %c0_i32 : i32
    %1 = arith.extui %0 : i1 to i32
    %c0_i32_0 = arith.constant 0 : i32
    %2 = arith.cmpi ne, %1, %c0_i32_0 : i32
    scf.if %2 {
      %cst_10 = arith.constant 0.000000e+00 : f32
      %12 = vector.broadcast %cst_10 : f32 to vector<16x32xf32>
      %c0_11 = arith.constant 0 : index
      %c0_12 = arith.constant 0 : index
      %13 = vector.load %arg7[%c0_11, %c0_12] : memref<16x32xf32, #tpu.memory_space<vmem>>, vector<16x32xf32>
      tpu.vector_store %arg7[%c0_11, %c0_12], %12 {strides = array<i32>} : memref<16x32xf32, #tpu.memory_space<vmem>>, vector<16x32xf32>,
    } else {
    }
    %c0 = arith.constant 0 : index
    %c0_1 = arith.constant 0 : index
    %3 = vector.load %arg7[%c0, %c0_1] : memref<16x32xf32, #tpu.memory_space<vmem>>, vector<16x32xf32>
    %c0_2 = arith.constant 0 : index
    %c0_3 = arith.constant 0 : index
    %4 = vector.load %arg3[%c0_2, %c0_3] : memref<16x32xbf16, #tpu.memory_space<vmem>>, vector<16x32xbf16>
    %c0_4 = arith.constant 0 : index
    %c0_5 = arith.constant 0 : index
    %5 = vector.load %arg4[%c0_4, %c0_5] : memref<32x32xbf16, #tpu.memory_space<vmem>>, vector<32x32xbf16>
    %cst = arith.constant dense<0.000000e+00> : vector<16x32xf32>
    %6 = tpu.matmul %4, %5, %cst {dimension_numbers = #tpu.dot_dimension_numbers<[1], [0], [0], [1], [0, 0, 1, 1], [], []>} : vector<16x32xbf16>, vector<32x32xbf16>, vector<16x32xf32> -> vector<16x32xf32>
    %7 = arith.addf %3, %6 : vector<16x32xf32>
    %c0_6 = arith.constant 0 : index
    %c0_7 = arith.constant 0 : index
    %8 = vector.load %arg7[%c0_6, %c0_7] : memref<16x32xf32, #tpu.memory_space<vmem>>, vector<16x32xf32>
    tpu.vector_store %arg7[%c0_6, %c0_7], %7 {strides = array<i32>} : memref<16x32xf32, #tpu.memory_space<vmem>>, vector<16x32xf32>,
    %c0_i32_8 = arith.constant 0 : i32
    %9 = arith.cmpi eq, %arg2, %c0_i32_8 : i32
    %10 = arith.extui %9 : i1 to i32
    %c0_i32_9 = arith.constant 0 : i32
    %11 = arith.cmpi ne, %10, %c0_i32_9 : i32
    scf.if %11 {
      %c0_10 = arith.constant 0 : index
      %c0_11 = arith.constant 0 : index
      %12 = vector.load %arg7[%c0_10, %c0_11] : memref<16x32xf32, #tpu.memory_space<vmem>>, vector<16x32xf32>
      %c0_12 = arith.constant 0 : index
      %c0_13 = arith.constant 0 : index
      %13 = vector.load %arg5[%c0_12, %c0_13] : memref<16x32xf32, #tpu.memory_space<vmem>>, vector<16x32xf32>
      %14 = arith.addf %12, %13 : vector<16x32xf32>
      %c0_14 = arith.constant 0 : index
      %c0_15 = arith.constant 0 : index
      %15 = vector.load %arg6[%c0_14, %c0_15] : memref<16x32xf32, #tpu.memory_space<vmem>>, vector<16x32xf32>
      tpu.vector_store %arg6[%c0_14, %c0_15], %14 {strides = array<i32>} : memref<16x32xf32, #tpu.memory_space<vmem>>, vector<16x32xf32>,
    } else {
    }
    return
  }
  func.func @transform_0(%arg0: i32, %arg1: i32, %arg2: i32) -> (i32, i32) {
    %c0_i32 = arith.constant 0 : i32
    return %arg0, %arg2 : i32, i32
  }
  func.func @transform_1(%arg0: i32, %arg1: i32, %arg2: i32) -> (i32, i32) {
    %c0_i32 = arith.constant 0 : i32
    return %arg2, %arg1 : i32, i32
  }
  func.func @transform_2(%arg0: i32, %arg1: i32, %arg2: i32) -> (i32, i32) {
    %c0_i32 = arith.constant 0 : i32
    return %arg0, %arg1 : i32, i32
  }
  func.func @transform_3(%arg0: i32, %arg1: i32, %arg2: i32) -> (i32, i32) {
    %c0_i32 = arith.constant 0 : i32
    return %arg0, %arg1 : i32, i32
  }
}

module attributes {stable_mosaic.version = 11 : i64} {
  func.func @_norm_matmul_kernel(%arg0: i32, %arg1: i32, %arg2: memref<16x32xf32, #tpu.memory_space<vmem>>, %arg3: memref<1x32xf32, #tpu.memory_space<vmem>>, %arg4: memref<32x64xbf16, #tpu.memory_space<vmem>>, %arg5: memref<16x64xbf16, #tpu.memory_space<vmem>>, %arg6: memref<16x32xbf16, #tpu.memory_space<vmem>>) attributes {dimension_semantics = [#tpu.dimension_semantics<parallel>, #tpu.dimension_semantics<arbitrary>], iteration_bounds = array<i64: 1, 1>, scalar_prefetch = 0 : i64, scratch_operands = 1 : i64, tpu.core_type = #tpu.core_type<tc>, window_params = [{transform_indices = @transform_0, window_bounds = array<i64: 16, 32>}, {pipeline_mode = #tpu.pipeline_mode<synchronous>, transform_indices = @transform_1, window_bounds = array<i64: 1, 32>}, {transform_indices = @transform_2, window_bounds = array<i64: 32, 64>}, {transform_indices = @transform_3, window_bounds = array<i64: 16, 64>}]} {
    %c0_i32 = arith.constant 0 : i32
    %0 = arith.cmpi eq, %arg1, %c0_i32 : i32
    %1 = arith.extui %0 : i1 to i32
    %c0_i32_0 = arith.constant 0 : i32
    %2 = arith.cmpi ne, %1, %c0_i32_0 : i32
    scf.if %2 {
      %c0_6 = arith.constant 0 : index
      %c0_7 = arith.constant 0 : index
      %8 = vector.load %arg2[%c0_6, %c0_7] : memref<16x32xf32, #tpu.memory_space<vmem>>, vector<16x32xf32>
      %9 = arith.mulf %8, %8 : vector<16x32xf32>
      %cst_8 = arith.constant dense<0.000000e+00> : vector<16xf32>
      %10 = vector.multi_reduction <add>, %9, %cst_8 [1] : vector<16x32xf32> to vector<16xf32>
      %11 = vector.shape_cast %10 : vector<16xf32> to vector<16x1xf32>
      %cst_9 = arith.constant 3.200000e+01 : f32
      %12 = vector.broadcast %cst_9 : f32 to vector<16x1xf32>
      %13 = arith.divf %11, %12 : vector<16x1xf32>
      %cst_10 = arith.constant 9.99999997E-7 : f32
      %14 = vector.broadcast %cst_10 : f32 to vector<16x1xf32>
      %15 = arith.addf %13, %14 : vector<16x1xf32>
      %16 = math.rsqrt %15 : vector<16x1xf32>
      %17 = vector.broadcast %16 : vector<16x1xf32> to vector<16x32xf32>
      %18 = arith.mulf %8, %17 : vector<16x32xf32>
      %c0_11 = arith.constant 0 : index
      %c0_12 = arith.constant 0 : index
      %19 = vector.load %arg3[%c0_11, %c0_12] : memref<1x32xf32, #tpu.memory_space<vmem>>, vector<1x32xf32>
      %20 = vector.broadcast %19 : vector<1x32xf32> to vector<16x32xf32>
      %21 = arith.mulf %18, %20 : vector<16x32xf32>
      %22 = arith.truncf %21 : vector<16x32xf32> to vector<16x32xbf16>
      %c0_13 = arith.constant 0 : index
      %c0_14 = arith.constant 0 : index
      %23 = vector.load %arg6[%c0_13, %c0_14] : memref<16x32xbf16, #tpu.memory_space<vmem>>, vector<16x32xbf16>
      tpu.vector_store %arg6[%c0_13, %c0_14], %22 {strides = array<i32>} : memref<16x32xbf16, #tpu.memory_space<vmem>>, vector<16x32xbf16>,
    } else {
    }
    %c0 = arith.constant 0 : index
    %c0_1 = arith.constant 0 : index
    %3 = vector.load %arg6[%c0, %c0_1] : memref<16x32xbf16, #tpu.memory_space<vmem>>, vector<16x32xbf16>
    %c0_2 = arith.constant 0 : index
    %c0_3 = arith.constant 0 : index
    %4 = vector.load %arg4[%c0_2, %c0_3] : memref<32x64xbf16, #tpu.memory_space<vmem>>, vector<32x64xbf16>
    %cst = arith.constant dense<0.000000e+00> : vector<16x64xf32>
    %5 = tpu.matmul %3, %4, %cst {dimension_numbers = #tpu.dot_dimension_numbers<[1], [0], [0], [1], [0, 0, 1, 1], [], []>} : vector<16x32xbf16>, vector<32x64xbf16>, vector<16x64xf32> -> vector<16x64xf32>
    %6 = arith.truncf %5 : vector<16x64xf32> to vector<16x64xbf16>
    %c0_4 = arith.constant 0 : index
    %c0_5 = arith.constant 0 : index
    %7 = vector.load %arg5[%c0_4, %c0_5] : memref<16x64xbf16, #tpu.memory_space<vmem>>, vector<16x64xbf16>
    tpu.vector_store %arg5[%c0_4, %c0_5], %6 {strides = array<i32>} : memref<16x64xbf16, #tpu.memory_space<vmem>>, vector<16x64xbf16>,
    return
  }
  func.func @transform_0(%arg0: i32, %arg1: i32) -> (i32, i32) {
    %c0_i32 = arith.constant 0 : i32
    %c0_i32_0 = arith.constant 0 : i32
    return %arg0, %c0_i32 : i32, i32
  }
  func.func @transform_1(%arg0: i32, %arg1: i32) -> (i32, i32) {
    %c0_i32 = arith.constant 0 : i32
    %c0_i32_0 = arith.constant 0 : i32
    %c0_i32_1 = arith.constant 0 : i32
    return %c0_i32, %c0_i32_0 : i32, i32
  }
  func.func @transform_2(%arg0: i32, %arg1: i32) -> (i32, i32) {
    %c0_i32 = arith.constant 0 : i32
    %c0_i32_0 = arith.constant 0 : i32
    return %c0_i32, %arg1 : i32, i32
  }
  func.func @transform_3(%arg0: i32, %arg1: i32) -> (i32, i32) {
    %c0_i32 = arith.constant 0 : i32
    return %arg0, %arg1 : i32, i32
  }
}

module attributes {stable_mosaic.version = 11 : i64} {
  func.func @_norm_mlp_kernel(%arg0: i32, %arg1: i32, %arg2: memref<16x32xf32, #tpu.memory_space<vmem>>, %arg3: memref<1x32xf32, #tpu.memory_space<vmem>>, %arg4: memref<32x128xbf16, #tpu.memory_space<vmem>>, %arg5: memref<1x128xf32, #tpu.memory_space<vmem>>, %arg6: memref<128x32xbf16, #tpu.memory_space<vmem>>, %arg7: memref<1x32xf32, #tpu.memory_space<vmem>>, %arg8: memref<16x32xf32, #tpu.memory_space<vmem>>, %arg9: memref<16x32xf32, #tpu.memory_space<vmem>>, %arg10: memref<16x32xbf16, #tpu.memory_space<vmem>>) attributes {dimension_semantics = [#tpu.dimension_semantics<parallel>, #tpu.dimension_semantics<arbitrary>], iteration_bounds = array<i64: 1, 1>, scalar_prefetch = 0 : i64, scratch_operands = 2 : i64, tpu.core_type = #tpu.core_type<tc>, window_params = [{transform_indices = @transform_0, window_bounds = array<i64: 16, 32>}, {pipeline_mode = #tpu.pipeline_mode<synchronous>, transform_indices = @transform_1, window_bounds = array<i64: 1, 32>}, {transform_indices = @transform_2, window_bounds = array<i64: 32, 128>}, {transform_indices = @transform_3, window_bounds = array<i64: 1, 128>}, {transform_indices = @transform_4, window_bounds = array<i64: 128, 32>}, {pipeline_mode = #tpu.pipeline_mode<synchronous>, transform_indices = @transform_5, window_bounds = array<i64: 1, 32>}, {transform_indices = @transform_6, window_bounds = array<i64: 16, 32>}]} {
    %c0_i32 = arith.constant 0 : i32
    %0 = arith.cmpi eq, %arg1, %c0_i32 : i32
    %1 = arith.extui %0 : i1 to i32
    %c0_i32_0 = arith.constant 0 : i32
    %2 = arith.cmpi ne, %1, %c0_i32_0 : i32
    scf.if %2 {
      %c0_16 = arith.constant 0 : index
      %c0_17 = arith.constant 0 : index
      %24 = vector.load %arg2[%c0_16, %c0_17] : memref<16x32xf32, #tpu.memory_space<vmem>>, vector<16x32xf32>
      %c0_18 = arith.constant 0 : index
      %c0_19 = arith.constant 0 : index
      %25 = vector.load %arg7[%c0_18, %c0_19] : memref<1x32xf32, #tpu.memory_space<vmem>>, vector<1x32xf32>
      %26 = vector.broadcast %25 : vector<1x32xf32> to vector<16x32xf32>
      %27 = arith.addf %24, %26 : vector<16x32xf32>
      %c0_20 = arith.constant 0 : index
      %c0_21 = arith.constant 0 : index
      %28 = vector.load %arg9[%c0_20, %c0_21] : memref<16x32xf32, #tpu.memory_space<vmem>>, vector<16x32xf32>
      tpu.vector_store %arg9[%c0_20, %c0_21], %27 {strides = array<i32>} : memref<16x32xf32, #tpu.memory_space<vmem>>, vector<16x32xf32>,
      %29 = arith.mulf %24, %24 : vector<16x32xf32>
      %cst_22 = arith.constant dense<0.000000e+00> : vector<16xf32>
      %30 = vector.multi_reduction <add>, %29, %cst_22 [1] : vector<16x32xf32> to vector<16xf32>
      %31 = vector.shape_cast %30 : vector<16xf32> to vector<16x1xf32>
      %cst_23 = arith.constant 3.200000e+01 : f32
      %32 = vector.broadcast %cst_23 : f32 to vector<16x1xf32>
      %33 = arith.divf %31, %32 : vector<16x1xf32>
      %cst_24 = arith.constant 9.99999997E-7 : f32
      %34 = vector.broadcast %cst_24 : f32 to vector<16x1xf32>
      %35 = arith.addf %33, %34 : vector<16x1xf32>
      %36 = math.rsqrt %35 : vector<16x1xf32>
      %37 = vector.broadcast %36 : vector<16x1xf32> to vector<16x32xf32>
      %38 = arith.mulf %24, %37 : vector<16x32xf32>
      %c0_25 = arith.constant 0 : index
      %c0_26 = arith.constant 0 : index
      %39 = vector.load %arg3[%c0_25, %c0_26] : memref<1x32xf32, #tpu.memory_space<vmem>>, vector<1x32xf32>
      %40 = vector.broadcast %39 : vector<1x32xf32> to vector<16x32xf32>
      %41 = arith.mulf %38, %40 : vector<16x32xf32>
      %42 = arith.truncf %41 : vector<16x32xf32> to vector<16x32xbf16>
      %c0_27 = arith.constant 0 : index
      %c0_28 = arith.constant 0 : index
      %43 = vector.load %arg10[%c0_27, %c0_28] : memref<16x32xbf16, #tpu.memory_space<vmem>>, vector<16x32xbf16>
      tpu.vector_store %arg10[%c0_27, %c0_28], %42 {strides = array<i32>} : memref<16x32xbf16, #tpu.memory_space<vmem>>, vector<16x32xbf16>,
    } else {
    }
    %c0 = arith.constant 0 : index
    %c0_1 = arith.constant 0 : index
    %3 = vector.load %arg10[%c0, %c0_1] : memref<16x32xbf16, #tpu.memory_space<vmem>>, vector<16x32xbf16>
    %c0_2 = arith.constant 0 : index
    %c0_3 = arith.constant 0 : index
    %4 = vector.load %arg4[%c0_2, %c0_3] : memref<32x128xbf16, #tpu.memory_space<vmem>>, vector<32x128xbf16>
    %cst = arith.constant dense<0.000000e+00> : vector<16x128xf32>
    %5 = tpu.matmul %3, %4, %cst {dimension_numbers = #tpu.dot_dimension_numbers<[1], [0], [0], [1], [0, 0, 1, 1], [], []>} : vector<16x32xbf16>, vector<32x128xbf16>, vector<16x128xf32> -> vector<16x128xf32>
    %c0_4 = arith.constant 0 : index
    %c0_5 = arith.constant 0 : index
    %6 = vector.load %arg5[%c0_4, %c0_5] : memref<1x128xf32, #tpu.memory_space<vmem>>, vector<1x128xf32>
    %7 = vector.broadcast %6 : vector<1x128xf32> to vector<16x128xf32>
    %8 = arith.addf %5, %7 : vector<16x128xf32>
    %9 = arith.negf %8 : vector<16x128xf32>
    %10 = math.exp %9 : vector<16x128xf32>
    %cst_6 = arith.constant 1.000000e+00 : f32
    %11 = vector.broadcast %cst_6 : f32 to vector<16x128xf32>
    %12 = arith.addf %11, %10 : vector<16x128xf32>
    %13 = arith.divf %11, %12 : vector<16x128xf32>
    %14 = arith.mulf %8, %13 : vector<16x128xf32>
    %c0_7 = arith.constant 0 : index
    %c0_8 = arith.constant 0 : index
    %15 = vector.load %arg9[%c0_7, %c0_8] : memref<16x32xf32, #tpu.memory_space<vmem>>, vector<16x32xf32>
    %16 = arith.truncf %14 : vector<16x128xf32> to vector<16x128xbf16>
    %c0_9 = arith.constant 0 : index
    %c0_10 = arith.constant 0 : index
    %17 = vector.load %arg6[%c0_9, %c0_10] : memref<128x32xbf16, #tpu.memory_space<vmem>>, vector<128x32xbf16>
    %cst_11 = arith.constant dense<0.000000e+00> : vector<16x32xf32>
    %18 = tpu.matmul %16, %17, %cst_11 {dimension_numbers = #tpu.dot_dimension_numbers<[1], [0], [0], [1], [0, 0, 1, 1], [], []>} : vector<16x128xbf16>, vector<128x32xbf16>, vector<16x32xf32> -> vector<16x32xf32>
    %19 = arith.addf %15, %18 : vector<16x32xf32>
    %c0_12 = arith.constant 0 : index
    %c0_13 = arith.constant 0 : index
    %20 = vector.load %arg9[%c0_12, %c0_13] : memref<16x32xf32, #tpu.memory_space<vmem>>, vector<16x32xf32>
    tpu.vector_store %arg9[%c0_12, %c0_13], %19 {strides = array<i32>} : memref<16x32xf32, #tpu.memory_space<vmem>>, vector<16x32xf32>,
    %c0_i32_14 = arith.constant 0 : i32
    %21 = arith.cmpi eq, %arg1, %c0_i32_14 : i32
    %22 = arith.extui %21 : i1 to i32
    %c0_i32_15 = arith.constant 0 : i32
    %23 = arith.cmpi ne, %22, %c0_i32_15 : i32
    scf.if %23 {
      %c0_16 = arith.constant 0 : index
      %c0_17 = arith.constant 0 : index
      %24 = vector.load %arg9[%c0_16, %c0_17] : memref<16x32xf32, #tpu.memory_space<vmem>>, vector<16x32xf32>
      %c0_18 = arith.constant 0 : index
      %c0_19 = arith.constant 0 : index
      %25 = vector.load %arg8[%c0_18, %c0_19] : memref<16x32xf32, #tpu.memory_space<vmem>>, vector<16x32xf32>
      tpu.vector_store %arg8[%c0_18, %c0_19], %24 {strides = array<i32>} : memref<16x32xf32, #tpu.memory_space<vmem>>, vector<16x32xf32>,
    } else {
    }
    return
  }
  func.func @transform_0(%arg0: i32, %arg1: i32) -> (i32, i32) {
    %c0_i32 = arith.constant 0 : i32
    %c0_i32_0 = arith.constant 0 : i32
    return %arg0, %c0_i32 : i32, i32
  }
  func.func @transform_1(%arg0: i32, %arg1: i32) -> (i32, i32) {
    %c0_i32 = arith.constant 0 : i32
    %c0_i32_0 = arith.constant 0 : i32
    %c0_i32_1 = arith.constant 0 : i32
    return %c0_i32, %c0_i32_0 : i32, i32
  }
  func.func @transform_2(%arg0: i32, %arg1: i32) -> (i32, i32) {
    %c0_i32 = arith.constant 0 : i32
    %c0_i32_0 = arith.constant 0 : i32
    return %c0_i32, %arg1 : i32, i32
  }
  func.func @transform_3(%arg0: i32, %arg1: i32) -> (i32, i32) {
    %c0_i32 = arith.constant 0 : i32
    %c0_i32_0 = arith.constant 0 : i32
    return %c0_i32, %arg1 : i32, i32
  }
  func.func @transform_4(%arg0: i32, %arg1: i32) -> (i32, i32) {
    %c0_i32 = arith.constant 0 : i32
    %c0_i32_0 = arith.constant 0 : i32
    return %arg1, %c0_i32 : i32, i32
  }
  func.func @transform_5(%arg0: i32, %arg1: i32) -> (i32, i32) {
    %c0_i32 = arith.constant 0 : i32
    %c0_i32_0 = arith.constant 0 : i32
    %c0_i32_1 = arith.constant 0 : i32
    return %c0_i32, %c0_i32_0 : i32, i32
  }
  func.func @transform_6(%arg0: i32, %arg1: i32) -> (i32, i32) {
    %c0_i32 = arith.constant 0 : i32
    %c0_i32_0 = arith.constant 0 : i32
    return %arg0, %c0_i32 : i32, i32
  }
}

module attributes {stable_mosaic.version = 11 : i64} {
  func.func @_matmul_bias_res_kernel(%arg0: i32, %arg1: i32, %arg2: i32, %arg3: memref<16x32xf32, #tpu.memory_space<vmem>>, %arg4: memref<32x64xbf16, #tpu.memory_space<vmem>>, %arg5: memref<1x64xf32, #tpu.memory_space<vmem>>, %arg6: memref<16x64xf32, #tpu.memory_space<vmem>>, %arg7: memref<16x64xf32, #tpu.memory_space<vmem>>, %arg8: memref<16x64xf32, #tpu.memory_space<vmem>>) attributes {dimension_semantics = [#tpu.dimension_semantics<parallel>, #tpu.dimension_semantics<parallel>, #tpu.dimension_semantics<arbitrary>], iteration_bounds = array<i64: 1, 1, 1>, scalar_prefetch = 0 : i64, scratch_operands = 1 : i64, tpu.core_type = #tpu.core_type<tc>, window_params = [{transform_indices = @transform_0, window_bounds = array<i64: 16, 32>}, {transform_indices = @transform_1, window_bounds = array<i64: 32, 64>}, {transform_indices = @transform_2, window_bounds = array<i64: 1, 64>}, {transform_indices = @transform_3, window_bounds = array<i64: 16, 64>}, {transform_indices = @transform_4, window_bounds = array<i64: 16, 64>}]} {
    %c0_i32 = arith.constant 0 : i32
    %0 = arith.cmpi eq, %arg2, %c0_i32 : i32
    %1 = arith.extui %0 : i1 to i32
    %c0_i32_0 = arith.constant 0 : i32
    %2 = arith.cmpi ne, %1, %c0_i32_0 : i32
    scf.if %2 {
      %cst_10 = arith.constant 0.000000e+00 : f32
      %13 = vector.broadcast %cst_10 : f32 to vector<16x64xf32>
      %c0_11 = arith.constant 0 : index
      %c0_12 = arith.constant 0 : index
      %14 = vector.load %arg8[%c0_11, %c0_12] : memref<16x64xf32, #tpu.memory_space<vmem>>, vector<16x64xf32>
      tpu.vector_store %arg8[%c0_11, %c0_12], %13 {strides = array<i32>} : memref<16x64xf32, #tpu.memory_space<vmem>>, vector<16x64xf32>,
    } else {
    }
    %c0 = arith.constant 0 : index
    %c0_1 = arith.constant 0 : index
    %3 = vector.load %arg8[%c0, %c0_1] : memref<16x64xf32, #tpu.memory_space<vmem>>, vector<16x64xf32>
    %c0_2 = arith.constant 0 : index
    %c0_3 = arith.constant 0 : index
    %4 = vector.load %arg3[%c0_2, %c0_3] : memref<16x32xf32, #tpu.memory_space<vmem>>, vector<16x32xf32>
    %5 = arith.truncf %4 : vector<16x32xf32> to vector<16x32xbf16>
    %c0_4 = arith.constant 0 : index
    %c0_5 = arith.constant 0 : index
    %6 = vector.load %arg4[%c0_4, %c0_5] : memref<32x64xbf16, #tpu.memory_space<vmem>>, vector<32x64xbf16>
    %cst = arith.constant dense<0.000000e+00> : vector<16x64xf32>
    %7 = tpu.matmul %5, %6, %cst {dimension_numbers = #tpu.dot_dimension_numbers<[1], [0], [0], [1], [0, 0, 1, 1], [], []>} : vector<16x32xbf16>, vector<32x64xbf16>, vector<16x64xf32> -> vector<16x64xf32>
    %8 = arith.addf %3, %7 : vector<16x64xf32>
    %c0_6 = arith.constant 0 : index
    %c0_7 = arith.constant 0 : index
    %9 = vector.load %arg8[%c0_6, %c0_7] : memref<16x64xf32, #tpu.memory_space<vmem>>, vector<16x64xf32>
    tpu.vector_store %arg8[%c0_6, %c0_7], %8 {strides = array<i32>} : memref<16x64xf32, #tpu.memory_space<vmem>>, vector<16x64xf32>,
    %c0_i32_8 = arith.constant 0 : i32
    %10 = arith.cmpi eq, %arg2, %c0_i32_8 : i32
    %11 = arith.extui %10 : i1 to i32
    %c0_i32_9 = arith.constant 0 : i32
    %12 = arith.cmpi ne, %11, %c0_i32_9 : i32
    scf.if %12 {
      %c0_10 = arith.constant 0 : index
      %c0_11 = arith.constant 0 : index
      %13 = vector.load %arg8[%c0_10, %c0_11] : memref<16x64xf32, #tpu.memory_space<vmem>>, vector<16x64xf32>
      %c0_12 = arith.constant 0 : index
      %c0_13 = arith.constant 0 : index
      %14 = vector.load %arg5[%c0_12, %c0_13] : memref<1x64xf32, #tpu.memory_space<vmem>>, vector<1x64xf32>
      %15 = vector.broadcast %14 : vector<1x64xf32> to vector<16x64xf32>
      %16 = arith.addf %13, %15 : vector<16x64xf32>
      %c0_14 = arith.constant 0 : index
      %c0_15 = arith.constant 0 : index
      %17 = vector.load %arg6[%c0_14, %c0_15] : memref<16x64xf32, #tpu.memory_space<vmem>>, vector<16x64xf32>
      %18 = arith.addf %16, %17 : vector<16x64xf32>
      %c0_16 = arith.constant 0 : index
      %c0_17 = arith.constant 0 : index
      %19 = vector.load %arg7[%c0_16, %c0_17] : memref<16x64xf32, #tpu.memory_space<vmem>>, vector<16x64xf32>
      tpu.vector_store %arg7[%c0_16, %c0_17], %18 {strides = array<i32>} : memref<16x64xf32, #tpu.memory_space<vmem>>, vector<16x64xf32>,
    } else {
    }
    return
  }
  func.func @transform_0(%arg0: i32, %arg1: i32, %arg2: i32) -> (i32, i32) {
    %c0_i32 = arith.constant 0 : i32
    return %arg0, %arg2 : i32, i32
  }
  func.func @transform_1(%arg0: i32, %arg1: i32, %arg2: i32) -> (i32, i32) {
    %c0_i32 = arith.constant 0 : i32
    return %arg2, %arg1 : i32, i32
  }
  func.func @transform_2(%arg0: i32, %arg1: i32, %arg2: i32) -> (i32, i32) {
    %c0_i32 = arith.constant 0 : i32
    %c0_i32_0 = arith.constant 0 : i32
    return %c0_i32, %arg1 : i32, i32
  }
  func.func @transform_3(%arg0: i32, %arg1: i32, %arg2: i32) -> (i32, i32) {
    %c0_i32 = arith.constant 0 : i32
    return %arg0, %arg1 : i32, i32
  }
  func.func @transform_4(%arg0: i32, %arg1: i32, %arg2: i32) -> (i32, i32) {
    %c0_i32 = arith.constant 0 : i32
    return %arg0, %arg1 : i32, i32
  }
}

</mosaic_0001>

<bundles_post_ra>
// kernel: transformer_forward.20
= control target key start
LH: loop header
LB: loop body
LE: loop exit
PB: predicated region body
PF: predicated region fallthrough
CT: control target
= control target key end

     0   :  { %vm26_vm0 = vcmask 523264   ;;  %v179_v7 = vmov 0.0   ;;  %vm180_vm1 = vmmov 0   ;;  %vm138_vm2 = vcmask 261120   ;;  %s240_s0 = inlined_call_operand.vmem [shape: f32[16,64], index: 0, kind: input, shape index: {}]   ;;  %s241_s2 = inlined_call_operand.vmem [shape: bf16[64,32], index: 2, kind: input, shape index: {}]   ;;  %s242_s1 = inlined_call_operand.vmem [shape: f32[1,64], index: 1, kind: input, shape index: {}]   ;;  %s243_s3 = inlined_call_operand.vmem [shape: f32[1,32], index: 3, kind: input, shape index: {}]   ;;  %s244_s4 = inlined_call_operand.vmem [shape: f32[16,32], index: 4, kind: output, shape index: {}]  }
   0x1   :  { %v22_v0 = vld [vmem:[%s240_s0] sm:$0xff]  ;;  %v23_v1 = vld [vmem:[%s240_s0 + $0x8] sm:$0xff]  ;;  %157 = vmatprep.subr.bf16.mxu0 %v179_v7  ;;  %v173_v9 = vld [vmem:[%s241_s2 + $0x10] sm:$0xff]   ;;  %165 = vmatprep.mubr.msk.bf16.mxu0 %vm180_vm1, %v179_v7 }
   0x2   :  { %v24_v2 = vmul.f32 %v22_v0, %v22_v0  ;;  %v25_v3 = vmul.f32 %v23_v1, %v23_v1  ;;  %v171_v6 = vld [vmem:[%s241_s2] sm:$0xff]   ;;  %v172_v8 = vld [vmem:[%s241_s2 + $0x8] sm:$0xff]   ;;  %v174_v10 = vld [vmem:[%s241_s2 + $0x18] sm:$0xff]  }
   0x3   :  { %158 = vmatpush3.bf16.msra.mxu0 %v171_v6  ;;  %v145_v20 = vld [vmem:[%s242_s1] ss:$0 sm:$0xff] }
   0x4   :  { %v27_v4 = vsel %vm26_vm0, %v24_v2, 0.0  ;;  %v30_v5 = vsel %vm26_vm0, %v25_v3, 0.0  ;;  %159 = vmatprep.subr.bf16.mxu0 %v179_v7  ;;  %v146_v26 = vld [vmem:[%s243_s3] ss:$0 sm:$0xff] }
   0x5   :  { %28 = vadd.xlane.f32.xlu0 %v27_v4 }
   0x7   :  { %160 = vmatpush3.bf16.msra.mxu0 %v172_v8 }
   0x8   :  { %161 = vmatprep.subr.bf16.mxu0 %v179_v7 }
   0x9   :  { %31 = vadd.xlane.f32.xlu0 %v30_v5 }
   0xb   :  { %162 = vmatpush3.bf16.msra.mxu0 %v173_v9 }
   0xc   :  { %163 = vmatprep.subr.bf16.mxu0 %v179_v7 }
   0xf   :  { %164 = vmatpush3.bf16.msra.mxu0 %v174_v10 }
  0x92   :  { %v29_v11 = vpop.xlane.xlu0 %28 }
  0x93   :  { %v34_v12 = vmul.f32 0.015625, %v29_v11 }
  0x95   :  { %v36_v13 = vadd.f32 1e-06, %v34_v12 }
  0x96   :  { %v32_v14 = vpop.xlane.xlu0 %31 }
  0x97   :  { %175 = vrsqrt.f32 %v36_v13  ;;  %v35_v15 = vmul.f32 0.015625, %v32_v14 }
  0x99   :  { %v37_v16 = vadd.f32 1e-06, %v35_v15 }
  0x9b   :  { %177 = vrsqrt.f32 %v37_v16 }
  0xa1   :  { %v176_v17 = vpop.eup %175 }
  0xa2   :  { %v40_v18 = vmul.f32 %v176_v17, %v22_v0 }
  0xa4   :  { %v49_v22 = vmul.f32 %v145_v20, %v40_v18 }
  0xa5   :  { %v178_v19 = vpop.eup %177 }
  0xa6   :  { %v41_v21 = vmul.f32 %v178_v19, %v23_v1 }
  0xa8   :  { %v50_v23 = vmul.f32 %v145_v20, %v41_v21 }
  0xaa   :  { %v51_v24 = vpack.c.bf16 %v50_v23, %v49_v22 }
  0xac   :  { %52 = vst.msk [vmem:[#allocation2] sm:$0xff] %vm26_vm0, %v51_v24 }
  0xb3   :  { %v53_v25 = vld [vmem:[#allocation2] sm:$0xff] }
  0xb4   :  { %166 = vmatmul.mubr.msk.bf16.vlgmr.msra.gmra.mrb[0].mxu0 %vm26_vm0, %v53_v25 }
 0x187   :  { %v131_v27 = vpop.f32.mrb[0].mxu0 }
 0x188   :  { %v132_v28 = vadd.f32 %v146_v26, %v131_v27  ;;  %v167_v29 = vpop.f32.mrb[1].mxu0 }
 0x189   :  { %v134_v30 = vpop.f32.mrb[2].mxu0 }
 0x18a   :  { %139 = vst.msk [vmem:[%s244_s4] sm:$0xff] %vm138_vm2, %v132_v28  ;;  %v135_v31 = vadd.f32 %v146_v26, %v134_v30  ;;  %v168_v32 = vpop.f32.mrb[3].mxu0 }
 0x18c   :  { %140 = vst.msk [vmem:[%s244_s4 + $0x8] sm:$0xff] %vm138_vm2, %v135_v31 }

// kernel: transformer_forward.31
= control target key start
LH: loop header
LB: loop body
LE: loop exit
PB: predicated region body
PF: predicated region fallthrough
CT: control target
= control target key end

     0   :  { %vm16_vm0 = vcmask 523264   ;;  %v138_v0 = vmov 0.0   ;;  %vm139_vm1 = vmmov 0   ;;  %vm44_vm2 = vcmask 261120   ;;  %s174_s1 = inlined_call_operand.vmem [shape: bf16[32,64], index: 1, kind: input, shape index: {}]   ;;  %s175_s0 = inlined_call_operand.vmem [shape: bf16[16,32], index: 0, kind: input, shape index: {}]   ;;  %s176_s2 = inlined_call_operand.vmem [shape: bf16[16,64], index: 2, kind: output, shape index: {}]  }
   0x1   :  { %125 = vmatprep.subr.bf16.mxu0 %v138_v0  ;;  %v135_v1 = vld [vmem:[%s174_s1] sm:$0xff]   ;;  %129 = vmatprep.mubr.msk.bf16.mxu0 %vm139_vm1, %v138_v0  ;;  %17 = vst.msk [vmem:[#allocation2] sm:$0xff] %vm16_vm0, %v138_v0  ;;  %18 = vst.msk [vmem:[#allocation2 + $0x8] sm:$0xff] %vm16_vm0, %v138_v0  ;;  %v136_v2 = vld [vmem:[%s174_s1 + $0x8] sm:$0xff]   ;;  %vm107_vm3 = vcmask 519168  }
   0x2   :  { %126 = vmatpush3.bf16.msra.mxu0 %v135_v1  ;;  %v137_v3 = vld [vmem:[%s175_s0] sm:$0xff]  }
   0x3   :  { %127 = vmatprep.subr.bf16.mxu0 %v138_v0 }
   0x6   :  { %128 = vmatpush3.bf16.msra.mxu0 %v136_v2 }
   0x8   :  { %v19_v4 = vld [vmem:[#allocation2] sm:$0xff]  ;;  %v20_v6 = vld [vmem:[#allocation2 + $0x8] sm:$0xff] }
   0x9   :  { %130 = vmatmul.mubr.msk.bf16.vlgmr.msra.gmra.mrb[0].mxu0 %vm44_vm2, %v137_v3 }
  0xdc   :  { %v82_v5 = vpop.f32.mrb[0].mxu0 }
  0xdd   :  { %v89_v7 = vadd.f32 %v82_v5, %v19_v4  ;;  %v131_v8 = vpop.f32.mrb[1].mxu0 }
  0xde   :  { %v85_v9 = vpop.f32.mrb[2].mxu0 }
  0xdf   :  { %92 = vst.msk [vmem:[#allocation2] sm:$0xff] %vm16_vm0, %v89_v7  ;;  %v90_v10 = vadd.f32 %v85_v9, %v20_v6  ;;  %v132_v11 = vpop.f32.mrb[3].mxu0 }
  0xe1   :  { %93 = vst.msk [vmem:[#allocation2 + $0x8] sm:$0xff] %vm16_vm0, %v90_v10 }
  0xe6   :  { %v97_v12 = vld [vmem:[#allocation2] sm:$0xff] }
  0xe7   :  { %v120_v13 = vpack.c.bf16 %v97_v12, %v97_v12 }
  0xe8   :  { %v98_v14 = vld [vmem:[#allocation2 + $0x8] sm:$0xff] }
  0xe9   :  { %108 = vst.msk [vmem:[%s176_s2] sm:$0xf] %vm107_vm3, %v120_v13  ;;  %v121_v15 = vpack.c.bf16 %v98_v14, %v98_v14 }
  0xeb   :  { %109 = vst.msk [vmem:[%s176_s2 + $0x4] sm:$0xf] %vm107_vm3, %v121_v15 }

// kernel: transformer_forward.21
= control target key start
LH: loop header
LB: loop body
LE: loop exit
PB: predicated region body
PF: predicated region fallthrough
CT: control target
= control target key end

     0   :  { %vm23_vm0 = vcmask 261120   ;;  %v154_v7 = vmov 0.0   ;;  %vm155_vm1 = vmmov 0   ;;  %vm120_vm2 = vcmask 257024   ;;  %s201_s0 = inlined_call_operand.vmem [shape: f32[16,32], index: 0, kind: input, shape index: {}]   ;;  %s202_s2 = inlined_call_operand.vmem [shape: bf16[32,32], index: 2, kind: input, shape index: {}]   ;;  %s203_s1 = inlined_call_operand.vmem [shape: f32[1,32], index: 1, kind: input, shape index: {}]   ;;  %s204_s3 = inlined_call_operand.vmem [shape: bf16[16,32], index: 3, kind: output, shape index: {}]  }
   0x1   :  { %v19_v0 = vld [vmem:[%s201_s0] sm:$0xff]  ;;  %v20_v1 = vld [vmem:[%s201_s0 + $0x8] sm:$0xff]  ;;  %138 = vmatprep.subr.bf16.mxu0 %v154_v7  ;;  %142 = vmatprep.mubr.msk.bf16.mxu0 %vm155_vm1, %v154_v7 }
   0x2   :  { %v21_v2 = vmul.f32 %v19_v0, %v19_v0  ;;  %v22_v3 = vmul.f32 %v20_v1, %v20_v1  ;;  %v148_v6 = vld [vmem:[%s202_s2] sm:$0xff]   ;;  %v149_v8 = vld [vmem:[%s202_s2 + $0x8] sm:$0xff]  }
   0x3   :  { %139 = vmatpush3.bf16.msra.mxu0 %v148_v6  ;;  %v127_v18 = vld [vmem:[%s203_s1] ss:$0 sm:$0xff] }
   0x4   :  { %v24_v4 = vsel %vm23_vm0, %v21_v2, 0.0  ;;  %v27_v5 = vsel %vm23_vm0, %v22_v3, 0.0  ;;  %140 = vmatprep.subr.bf16.mxu0 %v154_v7 }
   0x5   :  { %25 = vadd.xlane.f32.xlu0 %v24_v4 }
   0x7   :  { %141 = vmatpush3.bf16.msra.mxu0 %v149_v8 }
   0x9   :  { %28 = vadd.xlane.f32.xlu0 %v27_v5 }
  0x92   :  { %v26_v9 = vpop.xlane.xlu0 %25 }
  0x93   :  { %v31_v10 = vmul.f32 0.03125, %v26_v9 }
  0x95   :  { %v33_v11 = vadd.f32 1e-06, %v31_v10 }
  0x96   :  { %v29_v12 = vpop.xlane.xlu0 %28 }
  0x97   :  { %150 = vrsqrt.f32 %v33_v11  ;;  %v32_v13 = vmul.f32 0.03125, %v29_v12 }
  0x99   :  { %v34_v14 = vadd.f32 1e-06, %v32_v13 }
  0x9b   :  { %152 = vrsqrt.f32 %v34_v14 }
  0xa1   :  { %v151_v15 = vpop.eup %150 }
  0xa2   :  { %v37_v16 = vmul.f32 %v151_v15, %v19_v0 }
  0xa4   :  { %v46_v20 = vmul.f32 %v127_v18, %v37_v16 }
  0xa5   :  { %v153_v17 = vpop.eup %152 }
  0xa6   :  { %v38_v19 = vmul.f32 %v153_v17, %v20_v1 }
  0xa8   :  { %v47_v21 = vmul.f32 %v127_v18, %v38_v19 }
  0xaa   :  { %v48_v22 = vpack.c.bf16 %v47_v21, %v46_v20 }
  0xac   :  { %49 = vst.msk [vmem:[#allocation2] sm:$0xff] %vm23_vm0, %v48_v22 }
  0xb3   :  { %v50_v23 = vld [vmem:[#allocation2] sm:$0xff] }
  0xb4   :  { %143 = vmatmul.mubr.msk.bf16.vlgmr.msra.gmra.mrb[0].mxu0 %vm23_vm0, %v50_v23 }
 0x187   :  { %v105_v24 = vpop.f32.mrb[0].mxu0 }
 0x188   :  { %v133_v25 = vpack.c.bf16 %v105_v24, %v105_v24  ;;  %v144_v26 = vpop.f32.mrb[1].mxu0 }
 0x189   :  { %v108_v27 = vpop.f32.mrb[2].mxu0 }
 0x18a   :  { %121 = vst.msk [vmem:[%s204_s3] sm:$0xf] %vm120_vm2, %v133_v25  ;;  %v134_v28 = vpack.c.bf16 %v108_v27, %v108_v27  ;;  %v145_v29 = vpop.f32.mrb[3].mxu0 }
 0x18c   :  { %122 = vst.msk [vmem:[%s204_s3 + $0x4] sm:$0xf] %vm120_vm2, %v134_v28 }

// kernel: transformer_forward.23
= control target key start
LH: loop header
LB: loop body
LE: loop exit
PB: predicated region body
PF: predicated region fallthrough
CT: control target
= control target key end

     0   :  { %s932_s9 = smov 0   ;;  %s934_s10 = smov 0   ;;  %s1031_s0 = inlined_call_operand.vmem [shape: bf16[2,8,32], index: 0, kind: input, shape index: {}]   ;;  %s1032_s1 = inlined_call_operand.vmem [shape: bf16[2,8,64], index: 1, kind: input, shape index: {}]   ;;  %s1033_s2 = inlined_call_operand.vmem [shape: bf16[2,8,32], index: 2, kind: output, shape index: {}]  }
   0x1   :  { %s936_s11 = smov 0  }
   0x2 LB: > { %s24_s12 = sadd.s32 1, %s899_s10  ;;  %p747_p0 = scmp.ge.s32.totalorder %s903_s11, 1  ;;  %s903_s11 = sphi %s936_s11, %s12_s11   ;;  %s899_s10 = sphi %s934_s10, %s1035_s10   ;;  %s895_s9 = sphi %s932_s9, %s1034_s9  }
   0x3   : > { %p26_p1 = scmp.ge.s32.totalorder %s24_s12, 2  ;;  %p139_p2 = scmp.lt.s32.totalorder %s903_s11, 3 }
   0x5   : > { %s1037_s12 = smov (%p26_p1, %s24_s12), 0  ;;  %p140_p3 = pnand %p747_p0, %p139_p2 }
   0x6   : > { %p169_p4 = scmp.lt.s32.totalorder (!%p140_p3), %s895_s9, 1  ;;  %v905_v0 = vmov (!%p140_p3), 0.0   ;;  %vm906_vm0 = vmmov (!%p140_p3), 0   ;;  %vm190_vm1 = vcmask (!%p140_p3), 64512   ;;  %s907_s20 = smov (!%p140_p3), 96   ;;  %vm257_vm2 = vcmask (!%p140_p3), 1043456  }
   0x7   : > { %143 = sbr.rel (%p140_p3) target bundleno = 1445 (0x5a5), region = 28  ;;  %779 = vmatprep.subr.bf16.mxu0 (!%p140_p3), %v905_v0  ;;  %781 = vmatprep.mubr.msk.bf16.mxu0 (!%p140_p3), %vm906_vm0, %v905_v0  ;;  %s908_s21 = smov (!%p140_p3), 120   ;;  %vm419_vm3 = vcmask (!%p140_p3), 130112   ;;  %vm535_vm4 = vcmask (!%p140_p3), 195712   ;;  %vm651_vm5 = vcmask (!%p140_p3), 261312   ;;  %vm655_vm6 = vcmask (!%p140_p3), 257024  }
   0x8   : > { %785 = vmatprep.subr.bf16.mxu1 (!%p140_p3), %v905_v0  ;;  %787 = vmatprep.mubr.msk.bf16.mxu1 (!%p140_p3), %vm906_vm0, %v905_v0  ;;  %s909_s22 = smov (!%p140_p3), 112   ;;  %s910_s23 = smov (!%p140_p3), 104  }
   0x9   : > { %s911_s24 = smov (!%p140_p3), 88   ;;  %s912_s25 = smov (!%p140_p3), 72  }
   0xa   : > { %s913_s26 = smov (!%p140_p3), 80   ;;  %s914_s27 = smov (!%p140_p3), 8  }
   0xb   : > { %s915_s28 = smov (!%p140_p3), 16   ;;  %s916_s29 = smov (!%p140_p3), 24  }
   0xe   : > { %s1039_s9 = smov (!%p169_p4, %s895_s9), 1 }
   0xf   : > { %s956_s13 = sshll.u32 %s1039_s9, 2 }
  0x10   : > { %s179_s16 = scalar_lea.vmem %s1032_s1, %s956_s13  ;;  %s175_s19 = scalar_lea.vmem %s1031_s0, %s956_s13 }
  0x11   : > { %v189_v1 = vld [vmem:[%s179_s16] sm:$0xf]  ;;  %s186_s4 = scalar_lea.vmem %s1033_s2, %s956_s13 }
  0x12   : > { %v195_v2 = vsel %vm190_vm1, %v189_v1, 0  ;;  %v188_v3 = vld [vmem:[%s175_s19] sm:$0xf]  ;;  %v972_v9 = vcombine.low %v189_v1, %v189_v1 }
  0x13   : > { %780 = vmatpush3.bf16.xpose.msra.mxu0 %v195_v2  ;;  %v754_v10 = vcombine.low %v188_v3, %v188_v3 }
  0x14   : > { %797 = vmatprep.subr.bf16.mxu0 %v905_v0  ;;  %252 = vrot.lane.b32.xlu1 %v972_v9, %s907_s20 }
  0x18   : > { %307 = vrot.lane.b32.xlu1 %v972_v9, %s908_s21 }
  0x1a   : > { %782 = vmatmul.mubr.msk.bf16.vlgmr.msra.gmra.mrb[0].mxu0 %vm190_vm1, %v188_v3 }
  0x1b   : > { %799 = vmatprep.mubr.msk.bf16.mxu0 %vm906_vm0, %v905_v0 }
  0x1c   : > { %423 = vrot.lane.b32.xlu1 %v972_v9, %s909_s22 }
  0x20   : > { %421 = vrot.lane.b32.xlu1 %v754_v10, %s909_s22 }
  0x24   : > { %539 = vrot.lane.b32.xlu1 %v972_v9, %s910_s23 }
  0x28   : > { %537 = vrot.lane.b32.xlu1 %v754_v10, %s910_s23 }
  0x86   : > { %v253_v16 = vpop.permute.xlu1 %252 }
  0x87   : > { %v259_v17 = vsel %vm257_vm2, %v253_v16, 0 }
  0x88   : > { %786 = vmatpush3.bf16.msra.mxu1 %v259_v17 }
  0x89   : > { %791 = vmatprep.subr.bf16.mxu1 %v905_v0 }
  0x8a   : > { %v308_v20 = vpop.permute.xlu1 %307 }
  0x8b   : > { %v313_v22 = vsel %vm190_vm1, %v308_v20, 0 }
  0x8e   : > { %v424_v24 = vpop.permute.xlu1 %423 }
  0x8f   : > { %v429_v27 = vsel %vm190_vm1, %v424_v24, 0 }
  0x92   : > { %v422_v26 = vpop.permute.xlu1 %421 }
  0x96   : > { %v540_v28 = vpop.permute.xlu1 %539 }
  0x97   : > { %v545_v29 = vsel %vm190_vm1, %v540_v28, 0 }
  0x9a   : > { %v538_v30 = vpop.permute.xlu1 %537 }
  0xed   : > { %v231_v4 = vpop.f32.mrb[0].mxu0 }
  0xee   : > { %v783_v5 = vpop.f32.mrb[1].mxu0  ;;  %v237_v6 = vsel %vm190_vm1, %v231_v4, -inf }
  0xef   : > { %238 = vmax.xlane.f32.xlu0 %v237_v6  ;;  %v234_v7 = vpop.f32.mrb[2].mxu0 }
  0xf0   : > { %v784_v8 = vpop.f32.mrb[3].mxu0 }
 0x17c   : > { %v239_v11 = vpop.xlane.xlu0 %238 }
 0x17d   : > { %v240_v12 = vsub.f32 %v231_v4, %v239_v11 }
 0x17f   : > { %v241_v13 = vmul.f32 1.442695, %v240_v12 }
 0x181   : > { %865 = vpow2.f32 %v241_v13 }
 0x18b   : > { %v866_v14 = vpop.eup %865 }
 0x18c   : > { %v243_v15 = vsel %vm190_vm1, %v866_v14, 0.0 }
 0x18d   : > { %244 = vadd.xlane.f32.xlu0 %v243_v15 }
 0x1a3   : > { %305 = vrot.lane.b32.xlu0 %v754_v10, %s908_s21 }
 0x21a   : > { %v245_v18 = vpop.xlane.xlu0 %244 }
 0x21b   : > { %867 = vrcp.f32 %v245_v18 }
 0x21e   : > { %v306_v25 = vpop.permute.xlu0 %305 }
 0x225   : > { %v868_v19 = vpop.eup %867 }
 0x226   : > { %v247_v21 = vmul.f32 %v868_v19, %v866_v14 }
 0x228   : > { %v248_v23 = vpack.c.bf16 %v247_v21, %v247_v21 }
 0x22a   : > { %788 = vmatmul.mubr.msk.bf16.vlgmr.msra.gmra.mrb[0].mxu1 %vm190_vm1, %v248_v23 }
 0x22b   : > { %792 = vmatpush3.bf16.xpose.msra.mxu1 %v313_v22  ;;  %793 = vmatprep.mubr.msk.bf16.mxu1 %vm906_vm0, %v905_v0 }
 0x22c   : > { %803 = vmatprep.subr.bf16.mxu1 %v905_v0 }
 0x232   : > { %794 = vmatmul.mubr.msk.bf16.vlgmr.msra.gmra.mrb[4].mxu1 %vm190_vm1, %v306_v25 }
 0x233   : > { %804 = vmatpush3.bf16.xpose.msra.mxu1 %v429_v27  ;;  %805 = vmatprep.mubr.msk.bf16.mxu1 %vm906_vm0, %v905_v0 }
 0x234   : > { %815 = vmatprep.subr.bf16.mxu1 %v905_v0 }
 0x23a   : > { %806 = vmatmul.mubr.msk.bf16.vlgmr.msra.gmra.mrb[8].mxu1 %vm190_vm1, %v422_v26 }
 0x23b   : > { %816 = vmatpush3.bf16.xpose.msra.mxu1 %v545_v29  ;;  %817 = vmatprep.mubr.msk.bf16.mxu1 %vm906_vm0, %v905_v0 }
 0x242   : > { %818 = vmatmul.mubr.msk.bf16.vlgmr.msra.gmra.mrb[12].mxu1 %vm190_vm1, %v538_v30 }
 0x2fd   : > { %v295_v31 = vpop.f32.mrb[0].mxu1 }
 0x2fe   : > { %301 = vst.msk [vmem:[#allocation2] sm:$0xff] %vm190_vm1, %v295_v31  ;;  %v789_v32 = vpop.f32.mrb[1].mxu1 }
 0x2ff   : > { %v298_v33 = vpop.f32.mrb[2].mxu1 }
 0x300   : > { %v790_v34 = vpop.f32.mrb[3].mxu1 }
 0x305   : > { %v349_v35 = vpop.f32.mrb[4].mxu1 }
 0x306   : > { %v795_v36 = vpop.f32.mrb[5].mxu1  ;;  %v355_v37 = vsel %vm190_vm1, %v349_v35, -inf }
 0x307   : > { %356 = vmax.xlane.f32.xlu1 %v355_v37  ;;  %v352_v38 = vpop.f32.mrb[6].mxu1 }
 0x308   : > { %v796_v39 = vpop.f32.mrb[7].mxu1 }
 0x30d   : > { %v465_v40 = vpop.f32.mrb[8].mxu1 }
 0x30e   : > { %v807_v41 = vpop.f32.mrb[9].mxu1  ;;  %v471_v42 = vsel %vm190_vm1, %v465_v40, -inf }
 0x30f   : > { %472 = vmax.xlane.f32.xlu0 %v471_v42  ;;  %v468_v43 = vpop.f32.mrb[10].mxu1 }
 0x310   : > { %v808_v44 = vpop.f32.mrb[11].mxu1 }
 0x315   : > { %v581_v45 = vpop.f32.mrb[12].mxu1 }
 0x316   : > { %v819_v46 = vpop.f32.mrb[13].mxu1  ;;  %v587_v47 = vsel %vm190_vm1, %v581_v45, -inf }
 0x317   : > { %588 = vmax.xlane.f32.xlu1 %v587_v47  ;;  %v584_v48 = vpop.f32.mrb[14].mxu1 }
 0x318   : > { %v820_v49 = vpop.f32.mrb[15].mxu1 }
 0x328   : > { %367 = vrot.lane.b32.xlu1 %v972_v9, %s911_s24 }
 0x394   : > { %v357_v50 = vpop.xlane.xlu1 %356 }
 0x395   : > { %v358_v51 = vsub.f32 %v349_v35, %v357_v50 }
 0x397   : > { %v359_v52 = vmul.f32 1.442695, %v358_v51 }
 0x399   : > { %869 = vpow2.f32 %v359_v52 }
 0x39c   : > { %v473_v53 = vpop.xlane.xlu0 %472 }
 0x39d   : > { %v474_v54 = vsub.f32 %v465_v40, %v473_v53 }
 0x39f   : > { %v475_v55 = vmul.f32 1.442695, %v474_v54 }
 0x3a1   : > { %871 = vpow2.f32 %v475_v55 }
 0x3a3   : > { %v870_v56 = vpop.eup %869 }
 0x3a4   : > { %v589_v57 = vpop.xlane.xlu1 %588  ;;  %v361_v58 = vsel %vm190_vm1, %v870_v56, 0.0 }
 0x3a5   : > { %v590_v59 = vsub.f32 %v581_v45, %v589_v57  ;;  %362 = vadd.xlane.f32.xlu0 %v361_v58 }
 0x3a7   : > { %v591_v60 = vmul.f32 1.442695, %v590_v59 }
 0x3a8   : > { %v368_v61 = vpop.permute.xlu1 %367 }
 0x3a9   : > { %873 = vpow2.f32 %v591_v60  ;;  %v373_v62 = vsel %vm257_vm2, %v368_v61, 0 }
 0x3aa   : > { %798 = vmatpush3.bf16.msra.mxu0 %v373_v62 }
 0x3ab   : > { %v872_v63 = vpop.eup %871  ;;  %809 = vmatprep.subr.bf16.mxu0 %v905_v0 }
 0x3ac   : > { %v477_v1 = vsel %vm190_vm1, %v872_v63, 0.0 }
 0x3ad   : > { %478 = vadd.xlane.f32.xlu1 %v477_v1 }
 0x3b3   : > { %v874_v2 = vpop.eup %873 }
 0x3b4   : > { %v593_v3 = vsel %vm190_vm1, %v874_v2, 0.0 }
 0x3b5   : > { %594 = vadd.xlane.f32.xlu0 %v593_v3 }
 0x3be   : > { %599 = vrot.lane.b32.xlu1 %v972_v9, %s912_s25 }
 0x3cb   : > { %483 = vrot.lane.b32.xlu0 %v972_v9, %s913_s26 }
 0x432   : > { %v363_v4 = vpop.xlane.xlu0 %362 }
 0x433   : > { %875 = vrcp.f32 %v363_v4 }
 0x43a   : > { %v479_v5 = vpop.xlane.xlu1 %478 }
 0x43b   : > { %877 = vrcp.f32 %v479_v5 }
 0x43d   : > { %v876_v6 = vpop.eup %875 }
 0x43e   : > { %v365_v7 = vmul.f32 %v876_v6, %v870_v56  ;;  %v600_v14 = vpop.permute.xlu1 %599 }
 0x43f   : > { %v605_v16 = vsel %vm257_vm2, %v600_v14, 0 }
 0x440   : > { %v366_v8 = vpack.c.bf16 %v365_v7, %v365_v7 }
 0x442   : > { %v595_v10 = vpop.xlane.xlu0 %594  ;;  %800 = vmatmul.mubr.msk.bf16.vlgmr.msra.gmra.mrb[4].mxu0 %vm190_vm1, %v366_v8 }
 0x443   : > { %879 = vrcp.f32 %v595_v10  ;;  %811 = vmatprep.mubr.msk.bf16.mxu0 %vm906_vm0, %v905_v0 }
 0x445   : > { %v878_v11 = vpop.eup %877 }
 0x446   : > { %v481_v12 = vmul.f32 %v878_v11, %v872_v63  ;;  %v484_v13 = vpop.permute.xlu0 %483 }
 0x447   : > { %v489_v9 = vsel %vm257_vm2, %v484_v13, 0 }
 0x448   : > { %810 = vmatpush3.bf16.msra.mxu0 %v489_v9  ;;  %v482_v15 = vpack.c.bf16 %v481_v12, %v481_v12 }
 0x449   : > { %821 = vmatprep.subr.bf16.mxu0 %v905_v0 }
 0x44b   : > { %812 = vmatmul.mubr.msk.bf16.vlgmr.msra.gmra.mrb[8].mxu0 %vm190_vm1, %v482_v15 }
 0x44c   : > { %822 = vmatpush3.bf16.msra.mxu0 %v605_v16  ;;  %823 = vmatprep.mubr.msk.bf16.mxu0 %vm906_vm0, %v905_v0 }
 0x44d   : > { %v880_v17 = vpop.eup %879 }
 0x44e   : > { %v597_v18 = vmul.f32 %v880_v17, %v874_v2 }
 0x450   : > { %v598_v19 = vpack.c.bf16 %v597_v18, %v597_v18 }
 0x453   : > { %824 = vmatmul.mubr.msk.bf16.vlgmr.msra.gmra.mrb[12].mxu0 %vm190_vm1, %v598_v19 }
 0x515   : > { %v409_v20 = vpop.f32.mrb[4].mxu0 }
 0x516   : > { %416 = vrot.lane.b32.xlu1 %v409_v20, %s914_s27  ;;  %v801_v21 = vpop.f32.mrb[5].mxu0 }
 0x517   : > { %v412_v22 = vpop.f32.mrb[6].mxu0 }
 0x518   : > { %v802_v23 = vpop.f32.mrb[7].mxu0 }
 0x51e   : > { %v525_v24 = vpop.f32.mrb[8].mxu0 }
 0x51f   : > { %532 = vrot.lane.b32.xlu0 %v525_v24, %s915_s28  ;;  %v813_v25 = vpop.f32.mrb[9].mxu0 }
 0x520   : > { %v528_v26 = vpop.f32.mrb[10].mxu0 }
 0x521   : > { %v814_v27 = vpop.f32.mrb[11].mxu0 }
 0x526   : > { %v641_v28 = vpop.f32.mrb[12].mxu0 }
 0x527   : > { %648 = vrot.lane.b32.xlu1 %v641_v28, %s916_s29  ;;  %v825_v0 = vpop.f32.mrb[13].mxu0 }
 0x528   : > { %v644_v29 = vpop.f32.mrb[14].mxu0 }
 0x529   : > { %v826_v30 = vpop.f32.mrb[15].mxu0 }
 0x588   : > { %v417_v31 = vpop.permute.xlu1 %416 }
 0x589   : > { %420 = vst.msk [vmem:[#allocation2] sm:$0xff] %vm419_vm3, %v417_v31 }
 0x591   : > { %v533_v32 = vpop.permute.xlu0 %532 }
 0x592   : > { %536 = vst.msk [vmem:[#allocation2] sm:$0xff] %vm535_vm4, %v533_v32 }
 0x599   : > { %v649_v33 = vpop.permute.xlu1 %648 }
 0x59a   : > { %652 = vst.msk [vmem:[#allocation2] sm:$0xff] %vm651_vm5, %v649_v33 }
 0x5a1   : > { %v653_v34 = vld [vmem:[#allocation2] sm:$0xff] }
 0x5a2   : > { %v654_v35 = vpack.c.bf16 %v653_v34, %v653_v34 }
 0x5a4   : > { %656 = vst.msk [vmem:[%s186_s4] sm:$0xf] %vm655_vm6, %v654_v35 }
 0x5a5 PF: > { %s12_s11 = sadd.s32 1, %s903_s11   ;;  %s1034_s9 = smov %s899_s10 }
 0x5a6   : > { %p9_p5 = scmp.ge.s32.totalorder %s12_s11, 4   ;;  %s1035_s10 = smov %s1037_s12 }
 0x5a8   :  { %11 = sbr.rel (!%p9_p5) target bundleno = 2 (0x2), region = 61 }

// kernel: transformer_forward.24
= control target key start
LH: loop header
LB: loop body
LE: loop exit
PB: predicated region body
PF: predicated region fallthrough
CT: control target
= control target key end

     0   :  { %vm19_vm0 = vcmask 261120   ;;  %v131_v0 = vmov 0.0   ;;  %vm132_vm1 = vmmov 0   ;;  %s181_s1 = inlined_call_operand.vmem [shape: bf16[32,32], index: 1, kind: input, shape index: {}]   ;;  %s182_s0 = inlined_call_operand.vmem [shape: bf16[16,32], index: 0, kind: input, shape index: {}]   ;;  %s183_s2 = inlined_call_operand.vmem [shape: f32[16,32], index: 2, kind: input, shape index: {}]   ;;  %s184_s3 = inlined_call_operand.vmem [shape: f32[16,32], index: 3, kind: output, shape index: {}]  }
   0x1   :  { %118 = vmatprep.subr.bf16.mxu0 %v131_v0  ;;  %v128_v1 = vld [vmem:[%s181_s1] sm:$0xff]   ;;  %122 = vmatprep.mubr.msk.bf16.mxu0 %vm132_vm1, %v131_v0  ;;  %20 = vst.msk [vmem:[#allocation2] sm:$0xff] %vm19_vm0, %v131_v0  ;;  %21 = vst.msk [vmem:[#allocation2 + $0x8] sm:$0xff] %vm19_vm0, %v131_v0  ;;  %v129_v2 = vld [vmem:[%s181_s1 + $0x8] sm:$0xff]  }
   0x2   :  { %119 = vmatpush3.bf16.msra.mxu0 %v128_v1  ;;  %v130_v3 = vld [vmem:[%s182_s0] sm:$0xff]   ;;  %v102_v14 = vld [vmem:[%s183_s2 + $0x8] sm:$0xff] }
   0x3   :  { %120 = vmatprep.subr.bf16.mxu0 %v131_v0  ;;  %v101_v12 = vld [vmem:[%s183_s2] sm:$0xff] }
   0x6   :  { %121 = vmatpush3.bf16.msra.mxu0 %v129_v2 }
   0x8   :  { %v22_v4 = vld [vmem:[#allocation2] sm:$0xff]  ;;  %v23_v6 = vld [vmem:[#allocation2 + $0x8] sm:$0xff] }
   0x9   :  { %123 = vmatmul.mubr.msk.bf16.vlgmr.msra.gmra.mrb[0].mxu0 %vm19_vm0, %v130_v3 }
  0xdc   :  { %v85_v5 = vpop.f32.mrb[0].mxu0 }
  0xdd   :  { %v92_v7 = vadd.f32 %v85_v5, %v22_v4  ;;  %v124_v8 = vpop.f32.mrb[1].mxu0 }
  0xde   :  { %v88_v9 = vpop.f32.mrb[2].mxu0 }
  0xdf   :  { %94 = vst.msk [vmem:[#allocation2] sm:$0xff] %vm19_vm0, %v92_v7  ;;  %v93_v10 = vadd.f32 %v88_v9, %v23_v6  ;;  %v125_v11 = vpop.f32.mrb[3].mxu0 }
  0xe1   :  { %95 = vst.msk [vmem:[#allocation2 + $0x8] sm:$0xff] %vm19_vm0, %v93_v10 }
  0xe6   :  { %v99_v13 = vld [vmem:[#allocation2] sm:$0xff] }
  0xe7   :  { %v103_v15 = vadd.f32 %v101_v12, %v99_v13 }
  0xe8   :  { %v100_v16 = vld [vmem:[#allocation2 + $0x8] sm:$0xff] }
  0xe9   :  { %105 = vst.msk [vmem:[%s184_s3] sm:$0xff] %vm19_vm0, %v103_v15  ;;  %v104_v17 = vadd.f32 %v102_v14, %v100_v16 }
  0xeb   :  { %106 = vst.msk [vmem:[%s184_s3 + $0x8] sm:$0xff] %vm19_vm0, %v104_v17 }

// kernel: transformer_forward.26
= control target key start
LH: loop header
LB: loop body
LE: loop exit
PB: predicated region body
PF: predicated region fallthrough
CT: control target
= control target key end

     0   :  { %vm23_vm0 = vcmask 261120   ;;  %v154_v7 = vmov 0.0   ;;  %vm155_vm1 = vmmov 0   ;;  %vm120_vm2 = vcmask 519168   ;;  %s201_s0 = inlined_call_operand.vmem [shape: f32[16,32], index: 0, kind: input, shape index: {}]   ;;  %s202_s2 = inlined_call_operand.vmem [shape: bf16[32,64], index: 2, kind: input, shape index: {}]   ;;  %s203_s1 = inlined_call_operand.vmem [shape: f32[1,32], index: 1, kind: input, shape index: {}]   ;;  %s204_s3 = inlined_call_operand.vmem [shape: bf16[16,64], index: 3, kind: output, shape index: {}]  }
   0x1   :  { %v19_v0 = vld [vmem:[%s201_s0] sm:$0xff]  ;;  %v20_v1 = vld [vmem:[%s201_s0 + $0x8] sm:$0xff]  ;;  %138 = vmatprep.subr.bf16.mxu0 %v154_v7  ;;  %142 = vmatprep.mubr.msk.bf16.mxu0 %vm155_vm1, %v154_v7 }
   0x2   :  { %v21_v2 = vmul.f32 %v19_v0, %v19_v0  ;;  %v22_v3 = vmul.f32 %v20_v1, %v20_v1  ;;  %v148_v6 = vld [vmem:[%s202_s2] sm:$0xff]   ;;  %v149_v8 = vld [vmem:[%s202_s2 + $0x8] sm:$0xff]  }
   0x3   :  { %139 = vmatpush3.bf16.msra.mxu0 %v148_v6  ;;  %v127_v18 = vld [vmem:[%s203_s1] ss:$0 sm:$0xff] }
   0x4   :  { %v24_v4 = vsel %vm23_vm0, %v21_v2, 0.0  ;;  %v27_v5 = vsel %vm23_vm0, %v22_v3, 0.0  ;;  %140 = vmatprep.subr.bf16.mxu0 %v154_v7 }
   0x5   :  { %25 = vadd.xlane.f32.xlu0 %v24_v4 }
   0x7   :  { %141 = vmatpush3.bf16.msra.mxu0 %v149_v8 }
   0x9   :  { %28 = vadd.xlane.f32.xlu0 %v27_v5 }
  0x92   :  { %v26_v9 = vpop.xlane.xlu0 %25 }
  0x93   :  { %v31_v10 = vmul.f32 0.03125, %v26_v9 }
  0x95   :  { %v33_v11 = vadd.f32 1e-06, %v31_v10 }
  0x96   :  { %v29_v12 = vpop.xlane.xlu0 %28 }
  0x97   :  { %150 = vrsqrt.f32 %v33_v11  ;;  %v32_v13 = vmul.f32 0.03125, %v29_v12 }
  0x99   :  { %v34_v14 = vadd.f32 1e-06, %v32_v13 }
  0x9b   :  { %152 = vrsqrt.f32 %v34_v14 }
  0xa1   :  { %v151_v15 = vpop.eup %150 }
  0xa2   :  { %v37_v16 = vmul.f32 %v151_v15, %v19_v0 }
  0xa4   :  { %v46_v20 = vmul.f32 %v127_v18, %v37_v16 }
  0xa5   :  { %v153_v17 = vpop.eup %152 }
  0xa6   :  { %v38_v19 = vmul.f32 %v153_v17, %v20_v1 }
  0xa8   :  { %v47_v21 = vmul.f32 %v127_v18, %v38_v19 }
  0xaa   :  { %v48_v22 = vpack.c.bf16 %v47_v21, %v46_v20 }
  0xac   :  { %49 = vst.msk [vmem:[#allocation2] sm:$0xff] %vm23_vm0, %v48_v22 }
  0xb3   :  { %v50_v23 = vld [vmem:[#allocation2] sm:$0xff] }
  0xb4   :  { %143 = vmatmul.mubr.msk.bf16.vlgmr.msra.gmra.mrb[0].mxu0 %vm23_vm0, %v50_v23 }
 0x187   :  { %v105_v24 = vpop.f32.mrb[0].mxu0 }
 0x188   :  { %v133_v25 = vpack.c.bf16 %v105_v24, %v105_v24  ;;  %v144_v26 = vpop.f32.mrb[1].mxu0 }
 0x189   :  { %v108_v27 = vpop.f32.mrb[2].mxu0 }
 0x18a   :  { %121 = vst.msk [vmem:[%s204_s3] sm:$0xf] %vm120_vm2, %v133_v25  ;;  %v134_v28 = vpack.c.bf16 %v108_v27, %v108_v27  ;;  %v145_v29 = vpop.f32.mrb[3].mxu0 }
 0x18c   :  { %122 = vst.msk [vmem:[%s204_s3 + $0x4] sm:$0xf] %vm120_vm2, %v134_v28 }

// kernel: transformer_forward.29
= control target key start
LH: loop header
LB: loop body
LE: loop exit
PB: predicated region body
PF: predicated region fallthrough
CT: control target
= control target key end

     0   :  { %vm39_vm0 = vcmask 261120   ;;  %v356_v10 = vmov 0.0   ;;  %vm357_vm1 = vmmov 0   ;;  %s454_s0 = inlined_call_operand.vmem [shape: f32[16,32], index: 0, kind: input, shape index: {}]   ;;  %s455_s5 = inlined_call_operand.vmem [shape: f32[1,32], index: 5, kind: input, shape index: {}]   ;;  %s456_s2 = inlined_call_operand.vmem [shape: bf16[32,128], index: 2, kind: input, shape index: {}]   ;;  %s457_s1 = inlined_call_operand.vmem [shape: f32[1,32], index: 1, kind: input, shape index: {}]   ;;  %s458_s4 = inlined_call_operand.vmem [shape: bf16[128,32], index: 4, kind: input, shape index: {}]   ;;  %s459_s3 = inlined_call_operand.vmem [shape: f32[1,128], index: 3, kind: input, shape index: {}]   ;;  %s460_s6 = inlined_call_operand.vmem [shape: f32[16,32], index: 6, kind: output, shape index: {}]  }
   0x1   :  { %v28_v0 = vld [vmem:[%s454_s0] sm:$0xff]  ;;  %v29_v2 = vld [vmem:[%s454_s0 + $0x8] sm:$0xff]  ;;  %304 = vmatprep.subr.bf16.mxu0 %v356_v10  ;;  %312 = vmatprep.subr.bf16.mxu1 %v356_v10  ;;  %v338_v29 = vld [vmem:[%s458_s4 + $0x10] sm:$0xff]  }
   0x2   :  { %v276_v1 = vld [vmem:[%s455_s5] ss:$0 sm:$0xff]  ;;  %v42_v3 = vmul.f32 %v28_v0, %v28_v0  ;;  %v43_v6 = vmul.f32 %v29_v2, %v29_v2  ;;  %v335_v11 = vld [vmem:[%s456_s2 + $0x8] sm:$0xff]   ;;  %308 = vmatprep.mubr.msk.bf16.mxu0 %vm357_vm1, %v356_v10  ;;  %328 = vmatprep.mubr.msk.bf16.mxu1 %vm357_vm1, %v356_v10  ;;  %v339_v30 = vld [vmem:[%s458_s4 + $0x18] sm:$0xff]  }
   0x3   :  { %v37_v4 = vadd.f32 %v276_v1, %v28_v0  ;;  %v38_v5 = vadd.f32 %v276_v1, %v29_v2  ;;  %v334_v9 = vld [vmem:[%s456_s2] sm:$0xff]   ;;  %v337_v28 = vld [vmem:[%s458_s4 + $0x8] sm:$0xff]   ;;  %v342_v33 = vld [vmem:[%s458_s4 + $0x30] sm:$0xff]  }
   0x4   :  { %v44_v7 = vsel %vm39_vm0, %v42_v3, 0.0  ;;  %v47_v8 = vsel %vm39_vm0, %v43_v6, 0.0  ;;  %305 = vmatpush3.bf16.msra.mxu0 %v334_v9  ;;  %v277_v21 = vld [vmem:[%s457_s1] ss:$0 sm:$0xff]  ;;  %v341_v32 = vld [vmem:[%s458_s4 + $0x28] sm:$0xff]   ;;  %v343_v34 = vld [vmem:[%s458_s4 + $0x38] sm:$0xff]  }
   0x5   :  { %40 = vst.msk [vmem:[#allocation2] sm:$0xff] %vm39_vm0, %v37_v4  ;;  %41 = vst.msk [vmem:[#allocation2 + $0x8] sm:$0xff] %vm39_vm0, %v38_v5  ;;  %45 = vadd.xlane.f32.xlu0 %v44_v7  ;;  %306 = vmatprep.subr.bf16.mxu0 %v356_v10  ;;  %v336_v27 = vld [vmem:[%s458_s4] sm:$0xff]  }
   0x6   :  { %313 = vmatpush3.bf16.msra.mxu1 %v336_v27  ;;  %v340_v31 = vld [vmem:[%s458_s4 + $0x20] sm:$0xff]  }
   0x7   :  { %314 = vmatprep.subr.bf16.mxu1 %v356_v10  ;;  %v278_v35 = vld [vmem:[%s459_s3] ss:$0 sm:$0xff] }
   0x8   :  { %307 = vmatpush3.bf16.msra.mxu0 %v335_v11 }
   0x9   :  { %48 = vadd.xlane.f32.xlu0 %v47_v8 }
   0xa   :  { %315 = vmatpush3.bf16.msra.mxu1 %v337_v28 }
   0xb   :  { %316 = vmatprep.subr.bf16.mxu1 %v356_v10 }
   0xc   :  { %v153_v53 = vld [vmem:[#allocation2] sm:$0xff]  ;;  %v154_v55 = vld [vmem:[#allocation2 + $0x8] sm:$0xff] }
   0xe   :  { %317 = vmatpush3.bf16.msra.mxu1 %v338_v29 }
   0xf   :  { %318 = vmatprep.subr.bf16.mxu1 %v356_v10 }
  0x12   :  { %319 = vmatpush3.bf16.msra.mxu1 %v339_v30 }
  0x13   :  { %320 = vmatprep.subr.bf16.mxu1 %v356_v10 }
  0x16   :  { %321 = vmatpush3.bf16.msra.mxu1 %v340_v31 }
  0x17   :  { %322 = vmatprep.subr.bf16.mxu1 %v356_v10 }
  0x1a   :  { %323 = vmatpush3.bf16.msra.mxu1 %v341_v32 }
  0x1b   :  { %324 = vmatprep.subr.bf16.mxu1 %v356_v10 }
  0x1e   :  { %325 = vmatpush3.bf16.msra.mxu1 %v342_v33 }
  0x1f   :  { %326 = vmatprep.subr.bf16.mxu1 %v356_v10 }
  0x22   :  { %327 = vmatpush3.bf16.msra.mxu1 %v343_v34 }
  0x92   :  { %v46_v12 = vpop.xlane.xlu0 %45 }
  0x93   :  { %v51_v13 = vmul.f32 0.03125, %v46_v12 }
  0x95   :  { %v53_v14 = vadd.f32 1e-06, %v51_v13 }
  0x96   :  { %v49_v15 = vpop.xlane.xlu0 %48 }
  0x97   :  { %344 = vrsqrt.f32 %v53_v14  ;;  %v52_v16 = vmul.f32 0.03125, %v49_v15 }
  0x99   :  { %v54_v17 = vadd.f32 1e-06, %v52_v16 }
  0x9b   :  { %346 = vrsqrt.f32 %v54_v17 }
  0xa1   :  { %v345_v18 = vpop.eup %344 }
  0xa2   :  { %v57_v19 = vmul.f32 %v345_v18, %v28_v0 }
  0xa4   :  { %v66_v23 = vmul.f32 %v277_v21, %v57_v19 }
  0xa5   :  { %v347_v20 = vpop.eup %346 }
  0xa6   :  { %v58_v22 = vmul.f32 %v347_v20, %v29_v2 }
  0xa8   :  { %v67_v24 = vmul.f32 %v277_v21, %v58_v22 }
  0xaa   :  { %v68_v25 = vpack.c.bf16 %v67_v24, %v66_v23 }
  0xac   :  { %69 = vst.msk [vmem:[#allocation3] sm:$0xff] %vm39_vm0, %v68_v25 }
  0xb3   :  { %v70_v26 = vld [vmem:[#allocation3] sm:$0xff] }
  0xb4   :  { %309 = vmatmul.mubr.msk.bf16.vlgmr.msra.gmra.mrb[0].mxu0 %vm39_vm0, %v70_v26 }
 0x187   :  { %v132_v36 = vpop.f32.mrb[0].mxu0 }
 0x188   :  { %v133_v37 = vadd.f32 %v278_v35, %v132_v36  ;;  %v310_v38 = vpop.f32.mrb[1].mxu0 }
 0x189   :  { %v135_v39 = vpop.f32.mrb[2].mxu0 }
 0x18a   :  { %v282_v40 = vmul.f32 -1.442695, %v133_v37  ;;  %v136_v41 = vadd.f32 %v278_v35, %v135_v39  ;;  %v311_v42 = vpop.f32.mrb[3].mxu0 }
 0x18c   :  { %348 = vpow2.f32 %v282_v40  ;;  %v283_v43 = vmul.f32 -1.442695, %v136_v41 }
 0x18e   :  { %350 = vpow2.f32 %v283_v43 }
 0x196   :  { %v349_v44 = vpop.eup %348 }
 0x197   :  { %v145_v45 = vadd.f32 1.0, %v349_v44 }
 0x198   :  { %v351_v46 = vpop.eup %350 }
 0x199   :  { %352 = vrcp.f32 %v145_v45  ;;  %v146_v47 = vadd.f32 1.0, %v351_v46 }
 0x19b   :  { %354 = vrcp.f32 %v146_v47 }
 0x1a3   :  { %v353_v48 = vpop.eup %352 }
 0x1a4   :  { %v151_v50 = vmul.f32 %v353_v48, %v133_v37 }
 0x1a5   :  { %v355_v49 = vpop.eup %354 }
 0x1a6   :  { %v152_v51 = vmul.f32 %v355_v49, %v136_v41 }
 0x1a8   :  { %v155_v52 = vpack.c.bf16 %v152_v51, %v151_v50 }
 0x1aa   :  { %329 = vmatmul.mubr.bf16.vlgmr.msra.gmra.mrb[0].mxu1 %v155_v52 }
 0x27d   :  { %v254_v54 = vpop.f32.mrb[0].mxu1 }
 0x27e   :  { %v261_v56 = vadd.f32 %v254_v54, %v153_v53  ;;  %v330_v57 = vpop.f32.mrb[1].mxu1 }
 0x27f   :  { %v257_v58 = vpop.f32.mrb[2].mxu1 }
 0x280   :  { %263 = vst.msk [vmem:[#allocation2] sm:$0xff] %vm39_vm0, %v261_v56  ;;  %v262_v59 = vadd.f32 %v257_v58, %v154_v55  ;;  %v331_v60 = vpop.f32.mrb[3].mxu1 }
 0x282   :  { %264 = vst.msk [vmem:[#allocation2 + $0x8] sm:$0xff] %vm39_vm0, %v262_v59 }
 0x287   :  { %v268_v61 = vld [vmem:[#allocation2] sm:$0xff] }
 0x288   :  { %270 = vst.msk [vmem:[%s460_s6] sm:$0xff] %vm39_vm0, %v268_v61 }
 0x289   :  { %v269_v62 = vld [vmem:[#allocation2 + $0x8] sm:$0xff] }
 0x28a   :  { %271 = vst.msk [vmem:[%s460_s6 + $0x8] sm:$0xff] %vm39_vm0, %v269_v62 }

// kernel: transformer_forward.39
= control target key start
LH: loop header
LB: loop body
LE: loop exit
PB: predicated region body
PF: predicated region fallthrough
CT: control target
= control target key end

     0   :  { %v179_v1 = vmov 0.0   ;;  %vm180_vm0 = vmmov 0   ;;  %vm23_vm1 = vcmask 523264   ;;  %s248_s0 = inlined_call_operand.vmem [shape: f32[16,32], index: 0, kind: input, shape index: {}]   ;;  %s249_s1 = inlined_call_operand.vmem [shape: bf16[32,64], index: 1, kind: input, shape index: {}]   ;;  %s250_s2 = inlined_call_operand.vmem [shape: f32[1,64], index: 2, kind: input, shape index: {}]   ;;  %s251_s3 = inlined_call_operand.vmem [shape: f32[16,64], index: 3, kind: input, shape index: {}]   ;;  %s252_s4 = inlined_call_operand.hbm [shape: f32[16,64], index: 4, kind: output, shape index: {}]  }
   0x1   :  { %v153_v0 = vld [vmem:[%s249_s1] sm:$0xff]   ;;  %140 = vmatprep.subr.bf16.mxu0 %v179_v1  ;;  %v154_v2 = vld [vmem:[%s249_s1 + $0x8] sm:$0xff]   ;;  %144 = vmatprep.mubr.msk.bf16.mxu0 %vm180_vm0, %v179_v1 }
   0x2   :  { %141 = vmatpush3.bf16.msra.mxu0 %v153_v0  ;;  %v28_v3 = vld [vmem:[%s248_s0] sm:$0xff]  ;;  %v29_v4 = vld [vmem:[%s248_s0 + $0x8] sm:$0xff] }
   0x3   :  { %9 = vsyncpa [#allocation4], 0  ;;  %142 = vmatprep.subr.bf16.mxu0 %v179_v1  ;;  %24 = vst.msk [vmem:[#allocation2] sm:$0xff] %vm23_vm1, %v179_v1  ;;  %v30_v5 = vpack.c.bf16 %v29_v4, %v28_v3  ;;  %vm47_vm2 = vcmask 261120   ;;  %v136_v14 = vld [vmem:[%s250_s2] ss:$0 sm:$0xff] }
   0x4   :  { %25 = vst.msk [vmem:[#allocation2 + $0x8] sm:$0xff] %vm23_vm1, %v179_v1  ;;  %v111_v16 = vld [vmem:[%s251_s3] sm:$0xff]  ;;  %s181_s25 = smov [#allocation3]   ;;  %v112_v19 = vld [vmem:[%s251_s3 + $0x8] sm:$0xff] }
   0x5   :  { %s122_s26 = sshll.u32 %s181_s25, 4  ;;  %s123_s26 = int_to_ptr.vmem [resolvable:$true] %s122_s26 }
   0x6   :  { %143 = vmatpush3.bf16.msra.mxu0 %v154_v2  ;;  %s155_s2 = scalar_lea.vmem %s123_s26, 256  ;;  %p160_p1 = scmp.lt.s32.totalorder %s123_s26, %s123_s26 }
   0x7   :  { %p156_p0 = scmp.ne.s32.totalorder %s123_s26, %s155_s2  ;;  %p161_p2 = scmp.lt.s32.totalorder %s155_s2, %s155_s2 }
   0x9   :  { %145 = vmatmul.mubr.msk.bf16.vlgmr.msra.gmra.mrb[0].mxu0 %vm47_vm2, %v30_v5  ;;  %p162_p3 = por %p161_p2, %p160_p1 }
   0xa   :  { %v26_v6 = vld [vmem:[#allocation2] sm:$0xff] }
   0xb   :  { %v27_v8 = vld [vmem:[#allocation2 + $0x8] sm:$0xff]  ;;  %p163_p4 = pnand %p162_p3, %p156_p0 }
  0xdc   :  { %v85_v7 = vpop.f32.mrb[0].mxu0 }
  0xdd   :  { %v92_v9 = vadd.f32 %v85_v7, %v26_v6  ;;  %v146_v10 = vpop.f32.mrb[1].mxu0 }
  0xde   :  { %v88_v11 = vpop.f32.mrb[2].mxu0 }
  0xdf   :  { %95 = vst.msk [vmem:[#allocation2] sm:$0xff] %vm23_vm1, %v92_v9  ;;  %v93_v12 = vadd.f32 %v88_v11, %v27_v8  ;;  %v147_v13 = vpop.f32.mrb[3].mxu0 }
  0xe1   :  { %96 = vst.msk [vmem:[#allocation2 + $0x8] sm:$0xff] %vm23_vm1, %v93_v12 }
  0xe6   :  { %v100_v15 = vld [vmem:[#allocation2] sm:$0xff] }
  0xe7   :  { %v109_v17 = vadd.f32 %v136_v14, %v100_v15 }
  0xe8   :  { %v101_v18 = vld [vmem:[#allocation2 + $0x8] sm:$0xff] }
  0xe9   :  { %v110_v20 = vadd.f32 %v136_v14, %v101_v18  ;;  %v113_v21 = vadd.f32 %v111_v16, %v109_v17 }
  0xeb   :  { %v114_v22 = vadd.f32 %v112_v19, %v110_v20  ;;  %115 = vst.msk [vmem:[#allocation3] sm:$0xff] %vm23_vm1, %v113_v21 }
  0xed   :  { %116 = vst.msk [vmem:[#allocation3 + $0x8] sm:$0xff] %vm23_vm1, %v114_v22 }
  0xee   :  { %166 = shalt.err (!%p163_p4)
}
  0xef   :  { %s167_s5 = scalar_lea.hbm %s252_s4, 256 }
  0xf0   :  { %p168_p5 = scmp.ne.s32.totalorder %s252_s4, %s167_s5  ;;  %p171_p6 = scmp.lt.u32.totalorder %s167_s5, %s252_s4 }
  0xf2   :  { %p173_p7 = pnand %p171_p6, %p168_p5 }
  0xf4   :  { %176 = shalt.err (!%p173_p7)
}
  0xf5   :  { %s182_s9 = smov 128   ;;  %s183_s10 = smov 8  }
  0xf6   :  { %128 = dma.vmem_to_hbm [thread:$0]  %s123_s26, 256, %s252_s4, [#allocation4], %s182_s9, %s182_s9, %s183_s10  }
  0xf7   :  { %177 = dma.done.wait [#allocation4], 256  }
  0xf8   :  { %178 = vsyncadd [#allocation4], 4294967040 }
  0xf9   :  { %132 = vsyncpa [#allocation4], 1 }

</bundles_post_ra>
